<compile_context>
chip_gen: v7x
topology: tpu7x:2x2x1
jax: 0.10.0
libtpu: 0.0.40
codegen_flags: <defaults>
</compile_context>

<pallas_src>
import functools

import jax
import jax.numpy as jnp
from jax.experimental import pallas as pl
from jax.experimental.pallas import tpu as pltpu

_LANES = 128  # lane-dense padded width for the hidden / class feature dims


def _round_up(x, m):
    return ((x + m - 1) // m) * m


def _pad_to(a, shape):
    pads = [(0, t - s) for s, t in zip(a.shape, shape)]
    if all(p == (0, 0) for p in pads):
        return a
    return jnp.pad(a, pads)


def _fused_lightgcn_kernel(x_ref, adj_ref, w1_ref, b1_ref, w2_ref, b2_ref,
                           w3_ref, b3_ref, o_ref,
                           adj_sc, s1_sc, h_sc, *, nclass):
    """Fused 3-layer GCN.

    Grid axis 0 streams f32 adj row blocks from HBM (auto double-buffered, so
    the adj DMA overlaps layer-1 compute). Each block is cast to bf16 and
    parked in the resident `adj_sc` scratch, which layers 2/3 reuse.
    """
    i = pl.program_id(0)
    tile = adj_ref.shape[0]
    row0 = pl.multiple_of(i * tile, tile)
    bf16, f32 = jnp.bfloat16, jnp.float32

    # ---- once: support1 = x @ W1 (bf16 MXU inputs, f32 accumulate) ----------
    @pl.when(i == 0)
    def _():
        s1 = jnp.dot(x_ref[...].astype(bf16), w1_ref[...].astype(bf16),
                     preferred_element_type=f32)
        s1_sc[...] = s1.astype(bf16)

    # ---- every step: stage this adj row block + layer-1 propagate -----------
    adj_blk = adj_ref[...].astype(bf16)        # f32 -> bf16 cast in-kernel (VPU)
    adj_sc[pl.ds(row0, tile), :] = adj_blk     # park for layers 2/3
    h1 = jnp.dot(adj_blk, s1_sc[...], preferred_element_type=f32) + b1_ref[...]
    h_sc[pl.ds(row0, tile), :] = jnp.maximum(h1, 0.0).astype(bf16)

    # ---- last step: layers 2 & 3 on the fully-resident adj/h, then softmax --
    @pl.when(i == pl.num_programs(0) - 1)
    def _():
        adj_full = adj_sc[...]
        w2b = w2_ref[...].astype(bf16)
        w3b = w3_ref[...].astype(bf16)

        s2 = jnp.dot(h_sc[...], w2b, preferred_element_type=f32)
        h2 = jnp.maximum(
            jnp.dot(adj_full, s2.astype(bf16), preferred_element_type=f32)
            + b2_ref[...], 0.0)

        s3 = jnp.dot(h2.astype(bf16), w3b, preferred_element_type=f32)
        z = (jnp.dot(adj_full, s3.astype(bf16), preferred_element_type=f32)
             + b3_ref[...])

        # log_softmax over the *real* class columns only: lane-padded class
        # columns are forced to -inf so they drop out of the max / LSE.
        col = jax.lax.broadcasted_iota(jnp.int32, z.shape, 1)
        z = jnp.where(col < nclass, z, -jnp.inf)
        zmax = jnp.max(z, axis=1, keepdims=True)
        lse = jnp.log(jnp.sum(jnp.exp(z - zmax), axis=1, keepdims=True)) + zmax
        o_ref[...] = (z - lse).astype(o_ref.dtype)


def lightgcn_forward(x, adj, params, *, tile_n=128):
    """Eval-mode lightGCN forward, fully fused into one Pallas kernel."""
    (w1, b1), (w2, b2), (w3, b3) = params
    n, nfeat = x.shape
    nhid, nclass = w1.shape[1], w3.shape[1]
    assert nhid <= _LANES and nclass <= _LANES

    tile_n = min(tile_n, _round_up(n, 8))
    n_pad = _round_up(n, tile_n)
    grid = (n_pad // tile_n,)

    # Lane-dense zero padding of the narrow hidden/class dims (zero weight
    # columns / biases give zero activations that never leak into real lanes).
    w1p, b1p = _pad_to(w1, (nfeat, _LANES)), _pad_to(b1, (1, _LANES))
    w2p, b2p = _pad_to(w2, (_LANES, _LANES)), _pad_to(b2, (1, _LANES))
    w3p, b3p = _pad_to(w3, (_LANES, _LANES)), _pad_to(b3, (1, _LANES))
    # adj / x stay f32 in HBM (cast in-kernel) -- no wrapper-side bf16 cast.
    xp = _pad_to(x, (n_pad, nfeat))
    adjp = _pad_to(adj, (n_pad, n_pad))
    # TODO(synk): when n % tile_n != 0 this wrapper pad re-reads the N*N adj;
    #             handle the ragged last row block in-kernel instead.

    # ---- VMEM budget / limit (v5e/v6e: 128 MiB, v7x: 64 MiB physical) -------
    try:
        phys_vmem = pltpu.get_tpu_info().vmem_capacity_bytes
    except Exception:
        phys_vmem = 64 * 1024 * 1024           # v7x-safe fallback
    vmem_limit = int(min(phys_vmem * 3 // 4, 100 * 1024 * 1024))
    est_vmem = (2 * n_pad * n_pad              # resident bf16 adj scratch
                + 2 * 2 * tile_n * n_pad * 4   # streamed f32 adj blocks (x2 buf)
                + 2 * n_pad * nfeat * 4        # resident f32 x
                + 2 * 2 * n_pad * _LANES       # s1 / h1 bf16 scratch
                + 6 * n_pad * _LANES * 4)      # output + layer-2/3 f32 temps
    if est_vmem > vmem_limit:
        raise NotImplementedError(
            f"graph too large for whole-graph-in-VMEM path "
            f"(~{est_vmem / 2**20:.1f} MiB > {vmem_limit / 2**20:.1f} MiB); "
            f"row-tiled fallback not implemented yet")

    flops = 2 * n_pad * (nfeat * _LANES + 2 * _LANES * _LANES
                         + 3 * n_pad * _LANES)
    bytes_accessed = 4 * (adjp.size + xp.size + n_pad * _LANES
                          + w1p.size + w2p.size + w3p.size + 3 * _LANES)

    kernel = functools.partial(_fused_lightgcn_kernel, nclass=nclass)
    out_padded = pl.pallas_call(
        kernel,
        out_shape=jax.ShapeDtypeStruct((n_pad, _LANES), jnp.float32),
        grid=grid,
        in_specs=[
            pl.BlockSpec((n_pad, nfeat), lambda i: (0, 0)),    # x (resident)
            pl.BlockSpec((tile_n, n_pad), lambda i: (i, 0)),   # adj (row blocks)
            pl.BlockSpec((nfeat, _LANES), lambda i: (0, 0)),   # w1
            pl.BlockSpec((1, _LANES), lambda i: (0, 0)),       # b1
            pl.BlockSpec((_LANES, _LANES), lambda i: (0, 0)),  # w2
            pl.BlockSpec((1, _LANES), lambda i: (0, 0)),       # b2
            pl.BlockSpec((_LANES, _LANES), lambda i: (0, 0)),  # w3
            pl.BlockSpec((1, _LANES), lambda i: (0, 0)),       # b3
        ],
        out_specs=pl.BlockSpec((n_pad, _LANES), lambda i: (0, 0)),
        scratch_shapes=[
            pltpu.VMEM((n_pad, n_pad), jnp.bfloat16),   # resident adj
            pltpu.VMEM((n_pad, _LANES), jnp.bfloat16),  # support1 = x @ W1
            pltpu.VMEM((n_pad, _LANES), jnp.bfloat16),  # h1
        ],
        compiler_params=pltpu.CompilerParams(
            dimension_semantics=("arbitrary",),
            vmem_limit_bytes=vmem_limit),
        cost_estimate=pl.CostEstimate(flops=flops,
                                      transcendentals=n_pad * _LANES,
                                      bytes_accessed=bytes_accessed),
    )(xp, adjp, w1p, b1p, w2p, b2p, w3p, b3p)

    return out_padded[:n, :nclass]


def init_gc_params(key, f_in, f_out):
    """Matches GraphConvolution.reset_parameters: U(-stdv, stdv), stdv=1/sqrt(f_out)."""
    kw, kb = jax.random.split(key)
    stdv = 1.0 / (f_out ** 0.5)
    w = jax.random.uniform(kw, (f_in, f_out), jnp.float32, -stdv, stdv)
    b = jax.random.uniform(kb, (1, f_out), jnp.float32, -stdv, stdv)
    return w, b


def reference_forward_f32(x, adj, params):
    (w1, b1), (w2, b2), (w3, b3) = params
    h = jax.nn.relu(adj @ (x @ w1) + b1)
    h = jax.nn.relu(adj @ (h @ w2) + b2)
    return jax.nn.log_softmax(adj @ (h @ w3) + b3, axis=1)


def reference_forward_bf16(x, adj, params):
    """Mirrors the kernel's bf16-matmul / f32-accumulate arithmetic exactly."""
    bf, f32 = jnp.bfloat16, jnp.float32
    adj_b = adj.astype(bf)

    def layer(h_b, w, b):
        s = jnp.dot(h_b, w.astype(bf), preferred_element_type=f32)
        return jnp.dot(adj_b, s.astype(bf), preferred_element_type=f32) + b

    (w1, b1), (w2, b2), (w3, b3) = params
    h = jax.nn.relu(layer(x.astype(bf), w1, b1)).astype(bf)
    h = jax.nn.relu(layer(h, w2, b2)).astype(bf)
    return jax.nn.log_softmax(layer(h, w3, b3), axis=1)


if __name__ == "__main__":
    key = jax.random.PRNGKey(0)
    k_x, k_adj, k1, k2, k3 = jax.random.split(key, 5)

    # Small Cora-like shapes: 256 nodes, 96 features, 16 hidden, 7 classes.
    N, nfeat, nhid, nclass = 256, 96, 16, 7
    dropout = 0.5   # only active in training mode; eval forward is dropout-free

    x = jax.random.normal(k_x, (N, nfeat), jnp.float32)

    # symmetric, row-normalized dense adjacency with self loops (~5% dense)
    a = (jax.random.uniform(k_adj, (N, N)) < 0.05).astype(jnp.float32)
    a = jnp.maximum(a, a.T) + jnp.eye(N, dtype=jnp.float32)
    adj = a / jnp.sum(a, axis=1, keepdims=True)

    params = (
        init_gc_params(k1, nfeat, nhid),
        init_gc_params(k2, nhid, nhid),
        init_gc_params(k3, nhid, nclass),
    )

    out = jax.block_until_ready(lightgcn_forward(x, adj, params))
    assert out.shape == (N, nclass)
    assert bool(jnp.all(jnp.isfinite(out)))

    # Apples-to-apples check vs a JAX reference with the same bf16-in/f32-acc math.
    ref_bf16 = reference_forward_bf16(x, adj, params)
    assert jnp.allclose(out, ref_bf16, atol=2e-2, rtol=2e-2), "mismatch vs bf16 reference"

    # Loose sanity check vs the full-f32 reference (bf16 matmul inputs cost <1% rel err).
    ref_f32 = reference_forward_f32(x, adj, params)
    assert jnp.allclose(out, ref_f32, atol=1e-1, rtol=1e-1), "mismatch vs f32 reference"

    print("KERNEL_OK")
</pallas_src>

<mosaic_0001>
module attributes {stable_mosaic.version = 11 : i64} {
  func.func @_fused_lightgcn_kernel(%arg0: i32, %arg1: memref<256x96xf32, #tpu.memory_space<vmem>>, %arg2: memref<128x256xf32, #tpu.memory_space<vmem>>, %arg3: memref<96x128xf32, #tpu.memory_space<vmem>>, %arg4: memref<1x128xf32, #tpu.memory_space<vmem>>, %arg5: memref<128x128xf32, #tpu.memory_space<vmem>>, %arg6: memref<1x128xf32, #tpu.memory_space<vmem>>, %arg7: memref<128x128xf32, #tpu.memory_space<vmem>>, %arg8: memref<1x128xf32, #tpu.memory_space<vmem>>, %arg9: memref<256x128xf32, #tpu.memory_space<vmem>>, %arg10: memref<256x256xbf16, #tpu.memory_space<vmem>>, %arg11: memref<256x128xbf16, #tpu.memory_space<vmem>>, %arg12: memref<256x128xbf16, #tpu.memory_space<vmem>>) attributes {dimension_semantics = [#tpu.dimension_semantics<arbitrary>], iteration_bounds = array<i64: 2>, scalar_prefetch = 0 : i64, scratch_operands = 3 : i64, tpu.core_type = #tpu.core_type<tc>, window_params = [{pipeline_mode = #tpu.pipeline_mode<synchronous>, transform_indices = @transform_0, window_bounds = array<i64: 256, 96>}, {transform_indices = @transform_1, window_bounds = array<i64: 128, 256>}, {pipeline_mode = #tpu.pipeline_mode<synchronous>, transform_indices = @transform_2, window_bounds = array<i64: 96, 128>}, {pipeline_mode = #tpu.pipeline_mode<synchronous>, transform_indices = @transform_3, window_bounds = array<i64: 1, 128>}, {pipeline_mode = #tpu.pipeline_mode<synchronous>, transform_indices = @transform_4, window_bounds = array<i64: 128, 128>}, {pipeline_mode = #tpu.pipeline_mode<synchronous>, transform_indices = @transform_5, window_bounds = array<i64: 1, 128>}, {pipeline_mode = #tpu.pipeline_mode<synchronous>, transform_indices = @transform_6, window_bounds = array<i64: 128, 128>}, {pipeline_mode = #tpu.pipeline_mode<synchronous>, transform_indices = @transform_7, window_bounds = array<i64: 1, 128>}, {pipeline_mode = #tpu.pipeline_mode<synchronous>, transform_indices = @transform_8, window_bounds = array<i64: 256, 128>}]} {
    %c128_i32 = arith.constant 128 : i32
    %0 = arith.muli %arg0, %c128_i32 : i32
    %1 = tpu.assume_multiple %0, 128 : i32
    %c0_i32 = arith.constant 0 : i32
    %2 = arith.cmpi eq, %arg0, %c0_i32 : i32
    %3 = arith.extui %2 : i1 to i32
    %c0_i32_0 = arith.constant 0 : i32
    %4 = arith.cmpi ne, %3, %c0_i32_0 : i32
    scf.if %4 {
      %c0_10 = arith.constant 0 : index
      %c0_11 = arith.constant 0 : index
      %22 = vector.load %arg1[%c0_10, %c0_11] : memref<256x96xf32, #tpu.memory_space<vmem>>, vector<256x96xf32>
      %23 = arith.truncf %22 : vector<256x96xf32> to vector<256x96xbf16>
      %c0_12 = arith.constant 0 : index
      %c0_13 = arith.constant 0 : index
      %24 = vector.load %arg3[%c0_12, %c0_13] : memref<96x128xf32, #tpu.memory_space<vmem>>, vector<96x128xf32>
      %25 = arith.truncf %24 : vector<96x128xf32> to vector<96x128xbf16>
      %cst_14 = arith.constant dense<0.000000e+00> : vector<256x128xf32>
      %26 = tpu.matmul %23, %25, %cst_14 {dimension_numbers = #tpu.dot_dimension_numbers<[1], [0], [0], [1], [0, 0, 1, 1], [], []>} : vector<256x96xbf16>, vector<96x128xbf16>, vector<256x128xf32> -> vector<256x128xf32>
      %27 = arith.truncf %26 : vector<256x128xf32> to vector<256x128xbf16>
      %c0_15 = arith.constant 0 : index
      %c0_16 = arith.constant 0 : index
      %28 = vector.load %arg11[%c0_15, %c0_16] : memref<256x128xbf16, #tpu.memory_space<vmem>>, vector<256x128xbf16>
      tpu.vector_store %arg11[%c0_15, %c0_16], %27 {strides = array<i32>} : memref<256x128xbf16, #tpu.memory_space<vmem>>, vector<256x128xbf16>,
    } else {
    }
    %c0 = arith.constant 0 : index
    %c0_1 = arith.constant 0 : index
    %5 = vector.load %arg2[%c0, %c0_1] : memref<128x256xf32, #tpu.memory_space<vmem>>, vector<128x256xf32>
    %6 = arith.truncf %5 : vector<128x256xf32> to vector<128x256xbf16>
    %7 = arith.index_cast %1 : i32 to index
    %c0_2 = arith.constant 0 : index
    %8 = vector.load %arg10[%7, %c0_2] : memref<256x256xbf16, #tpu.memory_space<vmem>>, vector<128x256xbf16>
    tpu.vector_store %arg10[%7, %c0_2], %6 {strides = array<i32>} : memref<256x256xbf16, #tpu.memory_space<vmem>>, vector<128x256xbf16>,
    %c0_3 = arith.constant 0 : index
    %c0_4 = arith.constant 0 : index
    %9 = vector.load %arg11[%c0_3, %c0_4] : memref<256x128xbf16, #tpu.memory_space<vmem>>, vector<256x128xbf16>
    %cst = arith.constant dense<0.000000e+00> : vector<128x128xf32>
    %10 = tpu.matmul %6, %9, %cst {dimension_numbers = #tpu.dot_dimension_numbers<[1], [0], [0], [1], [0, 0, 1, 1], [], []>} : vector<128x256xbf16>, vector<256x128xbf16>, vector<128x128xf32> -> vector<128x128xf32>
    %c0_5 = arith.constant 0 : index
    %c0_6 = arith.constant 0 : index
    %11 = vector.load %arg4[%c0_5, %c0_6] : memref<1x128xf32, #tpu.memory_space<vmem>>, vector<1x128xf32>
    %12 = vector.broadcast %11 : vector<1x128xf32> to vector<128x128xf32>
    %13 = arith.addf %10, %12 : vector<128x128xf32>
    %cst_7 = arith.constant 0.000000e+00 : f32
    %14 = vector.broadcast %cst_7 : f32 to vector<128x128xf32>
    %15 = arith.maximumf %13, %14 : vector<128x128xf32>
    %16 = arith.truncf %15 : vector<128x128xf32> to vector<128x128xbf16>
    %17 = arith.index_cast %1 : i32 to index
    %c0_8 = arith.constant 0 : index
    %18 = vector.load %arg12[%17, %c0_8] : memref<256x128xbf16, #tpu.memory_space<vmem>>, vector<128x128xbf16>
    tpu.vector_store %arg12[%17, %c0_8], %16 {strides = array<i32>} : memref<256x128xbf16, #tpu.memory_space<vmem>>, vector<128x128xbf16>,
    %c1_i32 = arith.constant 1 : i32
    %19 = arith.cmpi eq, %arg0, %c1_i32 : i32
    %20 = arith.extui %19 : i1 to i32
    %c0_i32_9 = arith.constant 0 : i32
    %21 = arith.cmpi ne, %20, %c0_i32_9 : i32
    scf.if %21 {
      %c0_10 = arith.constant 0 : index
      %c0_11 = arith.constant 0 : index
      %22 = vector.load %arg10[%c0_10, %c0_11] : memref<256x256xbf16, #tpu.memory_space<vmem>>, vector<256x256xbf16>
      %c0_12 = arith.constant 0 : index
      %c0_13 = arith.constant 0 : index
      %23 = vector.load %arg5[%c0_12, %c0_13] : memref<128x128xf32, #tpu.memory_space<vmem>>, vector<128x128xf32>
      %24 = arith.truncf %23 : vector<128x128xf32> to vector<128x128xbf16>
      %c0_14 = arith.constant 0 : index
      %c0_15 = arith.constant 0 : index
      %25 = vector.load %arg7[%c0_14, %c0_15] : memref<128x128xf32, #tpu.memory_space<vmem>>, vector<128x128xf32>
      %26 = arith.truncf %25 : vector<128x128xf32> to vector<128x128xbf16>
      %c0_16 = arith.constant 0 : index
      %c0_17 = arith.constant 0 : index
      %27 = vector.load %arg12[%c0_16, %c0_17] : memref<256x128xbf16, #tpu.memory_space<vmem>>, vector<256x128xbf16>
      %cst_18 = arith.constant dense<0.000000e+00> : vector<256x128xf32>
      %28 = tpu.matmul %27, %24, %cst_18 {dimension_numbers = #tpu.dot_dimension_numbers<[1], [0], [0], [1], [0, 0, 1, 1], [], []>} : vector<256x128xbf16>, vector<128x128xbf16>, vector<256x128xf32> -> vector<256x128xf32>
      %29 = arith.truncf %28 : vector<256x128xf32> to vector<256x128xbf16>
      %cst_19 = arith.constant dense<0.000000e+00> : vector<256x128xf32>
      %30 = tpu.matmul %22, %29, %cst_19 {dimension_numbers = #tpu.dot_dimension_numbers<[1], [0], [0], [1], [0, 0, 1, 1], [], []>} : vector<256x256xbf16>, vector<256x128xbf16>, vector<256x128xf32> -> vector<256x128xf32>
      %c0_20 = arith.constant 0 : index
      %c0_21 = arith.constant 0 : index
      %31 = vector.load %arg6[%c0_20, %c0_21] : memref<1x128xf32, #tpu.memory_space<vmem>>, vector<1x128xf32>
      %32 = vector.broadcast %31 : vector<1x128xf32> to vector<256x128xf32>
      %33 = arith.addf %30, %32 : vector<256x128xf32>
      %cst_22 = arith.constant 0.000000e+00 : f32
      %34 = vector.broadcast %cst_22 : f32 to vector<256x128xf32>
      %35 = arith.maximumf %33, %34 : vector<256x128xf32>
      %36 = arith.truncf %35 : vector<256x128xf32> to vector<256x128xbf16>
      %cst_23 = arith.constant dense<0.000000e+00> : vector<256x128xf32>
      %37 = tpu.matmul %36, %26, %cst_23 {dimension_numbers = #tpu.dot_dimension_numbers<[1], [0], [0], [1], [0, 0, 1, 1], [], []>} : vector<256x128xbf16>, vector<128x128xbf16>, vector<256x128xf32> -> vector<256x128xf32>
      %38 = arith.truncf %37 : vector<256x128xf32> to vector<256x128xbf16>
      %cst_24 = arith.constant dense<0.000000e+00> : vector<256x128xf32>
      %39 = tpu.matmul %22, %38, %cst_24 {dimension_numbers = #tpu.dot_dimension_numbers<[1], [0], [0], [1], [0, 0, 1, 1], [], []>} : vector<256x256xbf16>, vector<256x128xbf16>, vector<256x128xf32> -> vector<256x128xf32>
      %c0_25 = arith.constant 0 : index
      %c0_26 = arith.constant 0 : index
      %40 = vector.load %arg8[%c0_25, %c0_26] : memref<1x128xf32, #tpu.memory_space<vmem>>, vector<1x128xf32>
      %41 = vector.broadcast %40 : vector<1x128xf32> to vector<256x128xf32>
      %42 = arith.addf %39, %41 : vector<256x128xf32>
      %43 = tpu.iota {dimensions = array<i32: 1>} : vector<256x128xi32>
      %c7_i32 = arith.constant 7 : i32
      %44 = vector.broadcast %c7_i32 : i32 to vector<256x128xi32>
      %45 = arith.cmpi slt, %43, %44 : vector<256x128xi32>
      %cst_27 = arith.constant 0xFF800000 : f32
      %46 = vector.broadcast %cst_27 : f32 to vector<256x128xf32>
      %47 = arith.select %45, %42, %46 : vector<256x128xi1>, vector<256x128xf32>
      %cst_28 = arith.constant dense<0xFF800000> : vector<256xf32>
      %48 = vector.multi_reduction <maximumf>, %47, %cst_28 [1] : vector<256x128xf32> to vector<256xf32>
      %49 = vector.shape_cast %48 : vector<256xf32> to vector<256x1xf32>
      %50 = vector.broadcast %49 : vector<256x1xf32> to vector<256x128xf32>
      %51 = arith.subf %47, %50 : vector<256x128xf32>
      %52 = math.exp %51 : vector<256x128xf32>
      %cst_29 = arith.constant dense<0.000000e+00> : vector<256xf32>
      %53 = vector.multi_reduction <add>, %52, %cst_29 [1] : vector<256x128xf32> to vector<256xf32>
      %54 = vector.shape_cast %53 : vector<256xf32> to vector<256x1xf32>
      %55 = math.log %54 : vector<256x1xf32>
      %56 = arith.addf %55, %49 : vector<256x1xf32>
      %57 = vector.broadcast %56 : vector<256x1xf32> to vector<256x128xf32>
      %58 = arith.subf %47, %57 : vector<256x128xf32>
      %c0_30 = arith.constant 0 : index
      %c0_31 = arith.constant 0 : index
      %59 = vector.load %arg9[%c0_30, %c0_31] : memref<256x128xf32, #tpu.memory_space<vmem>>, vector<256x128xf32>
      tpu.vector_store %arg9[%c0_30, %c0_31], %58 {strides = array<i32>} : memref<256x128xf32, #tpu.memory_space<vmem>>, vector<256x128xf32>,
    } else {
    }
    return
  }
  func.func @transform_0(%arg0: i32) -> (i32, i32) {
    %c0_i32 = arith.constant 0 : i32
    %c0_i32_0 = arith.constant 0 : i32
    %c0_i32_1 = arith.constant 0 : i32
    return %c0_i32, %c0_i32_0 : i32, i32
  }
  func.func @transform_1(%arg0: i32) -> (i32, i32) {
    %c0_i32 = arith.constant 0 : i32
    %c0_i32_0 = arith.constant 0 : i32
    return %arg0, %c0_i32 : i32, i32
  }
  func.func @transform_2(%arg0: i32) -> (i32, i32) {
    %c0_i32 = arith.constant 0 : i32
    %c0_i32_0 = arith.constant 0 : i32
    %c0_i32_1 = arith.constant 0 : i32
    return %c0_i32, %c0_i32_0 : i32, i32
  }
  func.func @transform_3(%arg0: i32) -> (i32, i32) {
    %c0_i32 = arith.constant 0 : i32
    %c0_i32_0 = arith.constant 0 : i32
    %c0_i32_1 = arith.constant 0 : i32
    return %c0_i32, %c0_i32_0 : i32, i32
  }
  func.func @transform_4(%arg0: i32) -> (i32, i32) {
    %c0_i32 = arith.constant 0 : i32
    %c0_i32_0 = arith.constant 0 : i32
    %c0_i32_1 = arith.constant 0 : i32
    return %c0_i32, %c0_i32_0 : i32, i32
  }
  func.func @transform_5(%arg0: i32) -> (i32, i32) {
    %c0_i32 = arith.constant 0 : i32
    %c0_i32_0 = arith.constant 0 : i32
    %c0_i32_1 = arith.constant 0 : i32
    return %c0_i32, %c0_i32_0 : i32, i32
  }
  func.func @transform_6(%arg0: i32) -> (i32, i32) {
    %c0_i32 = arith.constant 0 : i32
    %c0_i32_0 = arith.constant 0 : i32
    %c0_i32_1 = arith.constant 0 : i32
    return %c0_i32, %c0_i32_0 : i32, i32
  }
  func.func @transform_7(%arg0: i32) -> (i32, i32) {
    %c0_i32 = arith.constant 0 : i32
    %c0_i32_0 = arith.constant 0 : i32
    %c0_i32_1 = arith.constant 0 : i32
    return %c0_i32, %c0_i32_0 : i32, i32
  }
  func.func @transform_8(%arg0: i32) -> (i32, i32) {
    %c0_i32 = arith.constant 0 : i32
    %c0_i32_0 = arith.constant 0 : i32
    %c0_i32_1 = arith.constant 0 : i32
    return %c0_i32, %c0_i32_0 : i32, i32
  }
}

</mosaic_0001>

<bundles_post_ra>
// kernel: tpu_custom_call.1
= control target key start
LH: loop header
LB: loop body
LE: loop exit
PB: predicated region body
PF: predicated region fallthrough
CT: control target
= control target key end

     0   :  { %13 = vsyncpa [#allocation6], 0  ;;  %s4104_s0 = inlined_call_operand.vmem [shape: f32[256,96], index: 0, kind: input, shape index: {}]   ;;  %s4105_s1 = inlined_call_operand.hbm [shape: f32[256,256], index: 1, kind: input, shape index: {}]   ;;  %s4106_s2 = inlined_call_operand.vmem [shape: f32[96,128], index: 2, kind: input, shape index: {}]   ;;  %s4107_s3 = inlined_call_operand.vmem [shape: f32[1,128], index: 3, kind: input, shape index: {}]   ;;  %s4108_s4 = inlined_call_operand.vmem [shape: f32[128,128], index: 4, kind: input, shape index: {}]   ;;  %s4109_s5 = inlined_call_operand.vmem [shape: f32[1,128], index: 5, kind: input, shape index: {}]   ;;  %s4110_s6 = inlined_call_operand.vmem [shape: f32[128,128], index: 6, kind: input, shape index: {}]   ;;  %s4111_s7 = inlined_call_operand.vmem [shape: f32[1,128], index: 7, kind: input, shape index: {}]   ;;  %s4112_s8 = inlined_call_operand.hbm [shape: f32[256,128], index: 8, kind: output, shape index: {}]  }
   0x1   :  { %15 = vsyncpa [#allocation6 + $0x1], 0 }
   0x2   :  { %16 = vsyncpa [#allocation7], 0  ;;  %s3063_s27 = smov 0   ;;  %s3065_s28 = smov 0  }
   0x3   :  { %s3067_s29 = smov 0   ;;  %s3069_s30 = smov 0  }
   0x4 LB: > { %s3082_s9 = sadd.s32 4294967295, %s3010_s30   ;;  %s3085_s10 = sadd.s32 1, %s3010_s30   ;;  %s3010_s30 = sphi %s3069_s30, %s4158_s30   ;;  %s3006_s29 = sphi %s3067_s29, %s4157_s29   ;;  %s3002_s28 = sphi %s3065_s28, %s4156_s28   ;;  %s2998_s27 = sphi %s3063_s27, %s4155_s27  }
   0x5   : > { %s47_s11 = ssub.s32 %s3010_s30, %s3085_s10  ;;  %s50_s12 = sadd.s32 1, %s3006_s29 }
   0x6   : > { %p48_p0 = scmp.eq.s32.totalorder %s47_s11, 0  ;;  %p57_p1 = scmp.ne.s32.totalorder %s3006_s29, %s3002_s28 }
   0x7   : > { %p58_p2 = scmp.eq.s32.totalorder %s3010_s30, 0  ;;  %p63_p3 = scmp.ne.s32.totalorder %s3002_s28, %s2998_s27 }
   0x8   : > { %s3095_s13 = scalar_select %p48_p0, %s3006_s29, %s50_s12  }
   0x9   : > { %p59_p4 = por %p58_p2, %p57_p1  ;;  %p64_p5 = scmp.eq.s32.totalorder %s3082_s9, 0 }
   0xa   : > { %p2748_p6 = scmp.lt.s32.totalorder %s3010_s30, 2  ;;  %s255_s15 = sand.u32 1, %s3006_s29  }
   0xb   : > { %p3099_p7 = por %p64_p5, %p63_p3  ;;  %s2174_s16 = sshll.u32 %s255_s15, 8 }
   0xc   : > { %s2210_s17 = sshll.u32 %s3010_s30, 12  ;;  %s259_s21 = scalar_lea.vmem [#allocation5], %s2174_s16 }
   0xd   : > { %s3108_s20 = scalar_lea.hbm %s4105_s1, %s2210_s17  ;;  %s267_s22 = sshll.u32 %s259_s21, 4  ;;  %s3110_s22 = int_to_ptr.vmem [resolvable:$true] %s267_s22 }
   0xe   : > { %p3112_p8 = pnand %p2748_p6, %p59_p4  ;;  %s3117_s24 = scalar_lea.sflag [#allocation6], %s255_s15 }
   0xf   : > { %s2916_s25 = scalar_lea.hbm %s3108_s20, 4096  ;;  %s2921_s11 = scalar_lea.hbm %s4105_s1, 8192 }
  0x10   : > { %p2917_p10 = scmp.ne.s32.totalorder %s3108_s20, %s2916_s25  ;;  %p2918_p11 = pneg %p3112_p8 }
  0x11   : > { %p2922_p0 = scmp.lt.u32.totalorder %s3108_s20, %s4105_s1  ;;  %p2923_p1 = scmp.lt.u32.totalorder %s2921_s11, %s2916_s25 }
  0x12   : > { %p2919_p12 = pnand %p2918_p11, %p2917_p10  ;;  %p2925_p3 = scmp.lt.u32.totalorder %s2916_s25, %s3108_s20 }
  0x13   : > { %p2924_p2 = por %p2923_p1, %p2922_p0 }
  0x14   : > { %p2920_p13 = pneg %p2919_p12 }
  0x15   : > { %p2926_p4 = por %p2925_p3, %p2924_p2 }
  0x17   : > { %p2927_p5 = pnand %p2926_p4, %p2920_p13 }
  0x19   : > { %2930 = shalt.err (!%p2927_p5)
}
  0x1a   : > { %s2931_s15 = scalar_lea.vmem %s3110_s22, 4096  ;;  %s3012_s17 = smov [#allocation5]  }
  0x1b   : > { %p2932_p6 = scmp.ne.s32.totalorder %s3110_s22, %s2931_s15  ;;  %s2936_s18 = sshll.u32 %s3012_s17, 4  ;;  %s2937_s18 = int_to_ptr.vmem [resolvable:$false] %s2936_s18 }
  0x1c   : > { %s2938_s19 = scalar_lea.vmem %s2937_s18, 8192  ;;  %p2939_p9 = scmp.lt.s32.totalorder %s3110_s22, %s2937_s18 }
  0x1d   : > { %p2934_p10 = pnand %p2932_p6, %p2918_p11  ;;  %p2940_p0 = scmp.lt.s32.totalorder %s2938_s19, %s2931_s15 }
  0x1f   : > { %p2935_p12 = pneg %p2934_p10  ;;  %p2941_p1 = por %p2940_p0, %p2939_p9 }
  0x21   : > { %p2942_p2 = pnand %p2941_p1, %p2935_p12 }
  0x23   : > { %2945 = shalt.err (!%p2942_p2)
}
  0x24   : > { %s3013_s21 = smov 256   ;;  %s3014_s25 = smov 16  }
  0x25   : > { %2747 = dma.hbm_to_vmem [thread:$0]  (!%p3112_p8), %s3108_s20, 4096, %s3110_s22, %s3117_s24, %s3013_s21, %s3013_s21, %s3014_s25  }
  0x26   : > { %p275_p11 = scmp.lt.s32.totalorder %s3010_s30, 3  ;;  %p4128_p13 = scmp.ge.s32.totalorder %s3010_s30, 1 }
  0x28   : > { %p276_p3 = pnand %p4128_p13, %p275_p11 }
  0x29   : > { %s281_s26 = sand.u32 (!%p276_p3), 1, %s3002_s28  }
  0x2a   : > { %279 = sbr.rel (%p276_p3) target bundleno = 2169 (0x879), region = 52  ;;  %s2179_s27 = sshll.u32 (!%p276_p3), %s281_s26, 8 }
  0x2b   : > { %s282_s11 = scalar_lea.sflag (!%p276_p3), [#allocation6], %s281_s26  ;;  %s3149_s12 = scalar_lea.vmem (!%p276_p3), [#allocation5], %s2179_s27 }
  0x31   : > { %2989 = dma.done.wait (%p3099_p7), %s282_s11, 4096  }
  0x32   : > { %2991 = vsyncadd (%p3099_p7), %s282_s11, 4294963200  ;;  %s2180_s16 = sshll.u32 %s3082_s9, 7  ;;  %p2181_p8 = scmp.ne.s32.totalorder %s3082_s9, 0 }
  0x33   : > { %v368_v0 = vld [vmem:[%s4106_s2] sm:$0xff] (!%p2181_p8)  ;;  %v369_v1 = vld [vmem:[%s4106_s2 + $0x8] sm:$0xff] (!%p2181_p8)  ;;  %v370_v2 = vld [vmem:[%s4106_s2 + $0x10] sm:$0xff] (!%p2181_p8)  ;;  %vm386_vm0 = vcmask (!%p2181_p8), 785408  }
  0x34   : > { %319 = sbr.rel (%p2181_p8) target bundleno = 320 (0x140), region = 60  ;;  %v380_v3 = vpack.c.bf16 (!%p2181_p8), %v369_v1, %v368_v0  ;;  %v371_v4 = vld [vmem:[%s4106_s2 + $0x18] sm:$0xff] (!%p2181_p8)  ;;  %v372_v6 = vld [vmem:[%s4106_s2 + $0x20] sm:$0xff] (!%p2181_p8)  ;;  %v373_v7 = vld [vmem:[%s4106_s2 + $0x28] sm:$0xff] (!%p2181_p8) }
  0x35   : > { %v381_v5 = vpack.c.bf16 (!%p2181_p8), %v371_v4, %v370_v2  ;;  %v320_v8 = vld [vmem:[%s4104_s0] sm:$0xff] (!%p2181_p8)  ;;  %v321_v9 = vld [vmem:[%s4104_s0 + $0x8] sm:$0xff] (!%p2181_p8)  ;;  %v382_v11 = vpack.c.bf16 (!%p2181_p8), %v373_v7, %v372_v6  ;;  %v374_v14 = vld [vmem:[%s4106_s2 + $0x30] sm:$0xff] (!%p2181_p8) }
  0x36   : > { %2570 = vmatprep.subr.bf16.mxu0 (!%p2181_p8), %v380_v3  ;;  %2710 = vmatprep.subr.bf16.mxu1 (!%p2181_p8), %v380_v3  ;;  %v336_v10 = vld [vmem:[%s4104_s0 + $0x80] sm:$0xff] (!%p2181_p8)  ;;  %v352_v12 = vpack.c.bf16 (!%p2181_p8), %v321_v9, %v320_v8  ;;  %v337_v13 = vld [vmem:[%s4104_s0 + $0x88] sm:$0xff] (!%p2181_p8)  ;;  %v375_v15 = vld [vmem:[%s4106_s2 + $0x38] sm:$0xff] (!%p2181_p8) }
  0x37   : > { %2571 = vmatpush3.bf16.msra.mxu0 (!%p2181_p8), %v380_v3  ;;  %2716 = vmatpush3.bf16.msra.mxu1 (!%p2181_p8), %v380_v3  ;;  %v360_v16 = vpack.c.bf16 (!%p2181_p8), %v337_v13, %v336_v10  ;;  %v383_v17 = vpack.c.bf16 (!%p2181_p8), %v375_v15, %v374_v14  ;;  %v376_v18 = vld [vmem:[%s4106_s2 + $0x40] sm:$0xff] (!%p2181_p8)  ;;  %v377_v19 = vld [vmem:[%s4106_s2 + $0x48] sm:$0xff] (!%p2181_p8)  ;;  %v378_v21 = vld [vmem:[%s4106_s2 + $0x50] sm:$0xff] (!%p2181_p8) }
  0x38   : > { %2572 = vmatprep.subr.bf16.mxu0 (!%p2181_p8), %v381_v5  ;;  %2711 = vmatprep.subr.bf16.mxu1 (!%p2181_p8), %v381_v5  ;;  %v384_v20 = vpack.c.bf16 (!%p2181_p8), %v377_v19, %v376_v18  ;;  %v379_v22 = vld [vmem:[%s4106_s2 + $0x58] sm:$0xff] (!%p2181_p8)  ;;  %v322_v24 = vld [vmem:[%s4104_s0 + $0x10] sm:$0xff] (!%p2181_p8)  ;;  %v324_v28 = vld [vmem:[%s4104_s0 + $0x20] sm:$0xff] (!%p2181_p8) }
  0x39   : > { %2582 = vmatprep.mubr.msk.bf16.mxu0 (!%p2181_p8), %vm386_vm0, %v352_v12  ;;  %2598 = vmatprep.mubr.msk.bf16.mxu1 (!%p2181_p8), %vm386_vm0, %v360_v16  ;;  %v385_v23 = vpack.c.bf16 (!%p2181_p8), %v379_v22, %v378_v21  ;;  %v323_v25 = vld [vmem:[%s4104_s0 + $0x18] sm:$0xff] (!%p2181_p8)  ;;  %v338_v26 = vld [vmem:[%s4104_s0 + $0x90] sm:$0xff] (!%p2181_p8)  ;;  %v325_v29 = vld [vmem:[%s4104_s0 + $0x28] sm:$0xff] (!%p2181_p8) }
  0x3a   : > { %v339_v27 = vld [vmem:[%s4104_s0 + $0x98] sm:$0xff] (!%p2181_p8)  ;;  %v340_v30 = vld [vmem:[%s4104_s0 + $0xa0] sm:$0xff] (!%p2181_p8)  ;;  %v341_v31 = vld [vmem:[%s4104_s0 + $0xa8] sm:$0xff] (!%p2181_p8)  ;;  %v353_v32 = vpack.c.bf16 (!%p2181_p8), %v323_v25, %v322_v24  ;;  %v354_v34 = vpack.c.bf16 (!%p2181_p8), %v325_v29, %v324_v28 }
  0x3b   : > { %2573 = vmatpush3.bf16.msra.mxu0 %v381_v5  ;;  %2717 = vmatpush3.bf16.msra.mxu1 %v381_v5  ;;  %v361_v33 = vpack.c.bf16 %v339_v27, %v338_v26  ;;  %v362_v35 = vpack.c.bf16 %v341_v31, %v340_v30  ;;  %v326_v36 = vld [vmem:[%s4104_s0 + $0x30] sm:$0xff]  ;;  %v327_v37 = vld [vmem:[%s4104_s0 + $0x38] sm:$0xff]  ;;  %v328_v40 = vld [vmem:[%s4104_s0 + $0x40] sm:$0xff] }
  0x3c   : > { %2574 = vmatprep.subr.bf16.mxu0 %v382_v11  ;;  %2712 = vmatprep.subr.bf16.mxu1 %v382_v11  ;;  %v342_v38 = vld [vmem:[%s4104_s0 + $0xb0] sm:$0xff]  ;;  %v343_v39 = vld [vmem:[%s4104_s0 + $0xb8] sm:$0xff]  ;;  %v329_v41 = vld [vmem:[%s4104_s0 + $0x48] sm:$0xff]  ;;  %v355_v44 = vpack.c.bf16 %v327_v37, %v326_v36 }
  0x3d   : > { %v344_v42 = vld [vmem:[%s4104_s0 + $0xc0] sm:$0xff]  ;;  %v345_v43 = vld [vmem:[%s4104_s0 + $0xc8] sm:$0xff]  ;;  %v363_v45 = vpack.c.bf16 %v343_v39, %v342_v38  ;;  %v356_v46 = vpack.c.bf16 %v329_v41, %v328_v40  ;;  %v330_v48 = vld [vmem:[%s4104_s0 + $0x50] sm:$0xff] }
  0x3e   : > { %v364_v47 = vpack.c.bf16 %v345_v43, %v344_v42  ;;  %v331_v49 = vld [vmem:[%s4104_s0 + $0x58] sm:$0xff]  ;;  %v346_v50 = vld [vmem:[%s4104_s0 + $0xd0] sm:$0xff]  ;;  %v332_v52 = vld [vmem:[%s4104_s0 + $0x60] sm:$0xff] }
  0x3f   : > { %2575 = vmatpush3.bf16.msra.mxu0 %v382_v11  ;;  %2718 = vmatpush3.bf16.msra.mxu1 %v382_v11  ;;  %v347_v51 = vld [vmem:[%s4104_s0 + $0xd8] sm:$0xff]  ;;  %v333_v53 = vld [vmem:[%s4104_s0 + $0x68] sm:$0xff]  ;;  %v348_v54 = vld [vmem:[%s4104_s0 + $0xe0] sm:$0xff]  ;;  %v357_v56 = vpack.c.bf16 %v331_v49, %v330_v48 }
  0x40   : > { %2576 = vmatprep.subr.bf16.mxu0 %v383_v17  ;;  %2713 = vmatprep.subr.bf16.mxu1 %v383_v17  ;;  %v349_v55 = vld [vmem:[%s4104_s0 + $0xe8] sm:$0xff]  ;;  %v365_v57 = vpack.c.bf16 %v347_v51, %v346_v50  ;;  %v358_v58 = vpack.c.bf16 %v333_v53, %v332_v52  ;;  %v334_v60 = vld [vmem:[%s4104_s0 + $0x70] sm:$0xff]  ;;  %v335_v61 = vld [vmem:[%s4104_s0 + $0x78] sm:$0xff] }
  0x41   : > { %v366_v59 = vpack.c.bf16 %v349_v55, %v348_v54  ;;  %v350_v62 = vld [vmem:[%s4104_s0 + $0xf0] sm:$0xff]  ;;  %v351_v63 = vld [vmem:[%s4104_s0 + $0xf8] sm:$0xff]  ;;  %v359_v0 = vpack.c.bf16 %v335_v61, %v334_v60 }
  0x42   : > { %v367_v1 = vpack.c.bf16 %v351_v63, %v350_v62 }
  0x43   : > { %2577 = vmatpush3.bf16.msra.mxu0 %v383_v17  ;;  %2719 = vmatpush3.bf16.msra.mxu1 %v383_v17 }
  0x44   : > { %2578 = vmatprep.subr.bf16.mxu0 %v384_v20  ;;  %2714 = vmatprep.subr.bf16.mxu1 %v384_v20 }
  0x47   : > { %2579 = vmatpush3.bf16.msra.mxu0 %v384_v20  ;;  %2720 = vmatpush3.bf16.msra.mxu1 %v384_v20 }
  0x48   : > { %2580 = vmatprep.subr.bf16.mxu0 %v385_v23  ;;  %2715 = vmatprep.subr.bf16.mxu1 %v385_v23 }
  0x4b   : > { %2581 = vmatpush3.bf16.msra.mxu0 %v385_v23  ;;  %2721 = vmatpush3.bf16.msra.mxu1 %v385_v23 }
  0x4e   : > { %2583 = vmatmul.mubr.msk.bf16.vlgmr.msra.gmra.mrb[0].mxu0 %vm386_vm0, %v353_v32  ;;  %2599 = vmatmul.mubr.msk.bf16.vlgmr.msra.gmra.mrb[0].mxu1 %vm386_vm0, %v361_v33 }
  0x4f   : > { %2586 = vmatprep.mubr.msk.bf16.mxu0 %vm386_vm0, %v354_v34  ;;  %2602 = vmatprep.mubr.msk.bf16.mxu1 %vm386_vm0, %v362_v35 }
  0x56   : > { %2587 = vmatmul.mubr.msk.bf16.gmra.mrb[4].mxu0 %vm386_vm0, %v355_v44  ;;  %2603 = vmatmul.mubr.msk.bf16.gmra.mrb[4].mxu1 %vm386_vm0, %v363_v45 }
  0x57   : > { %2590 = vmatprep.mubr.msk.bf16.mxu0 %vm386_vm0, %v356_v46  ;;  %2606 = vmatprep.mubr.msk.bf16.mxu1 %vm386_vm0, %v364_v47 }
  0x5e   : > { %2591 = vmatmul.mubr.msk.bf16.gmra.mrb[8].mxu0 %vm386_vm0, %v357_v56  ;;  %2607 = vmatmul.mubr.msk.bf16.gmra.mrb[8].mxu1 %vm386_vm0, %v365_v57 }
  0x5f   : > { %2594 = vmatprep.mubr.msk.bf16.mxu0 %vm386_vm0, %v358_v58  ;;  %2610 = vmatprep.mubr.msk.bf16.mxu1 %vm386_vm0, %v366_v59 }
  0x66   : > { %2595 = vmatmul.mubr.msk.bf16.gmra.mrb[12].mxu0 %vm386_vm0, %v359_v0  ;;  %2611 = vmatmul.mubr.msk.bf16.gmra.mrb[12].mxu1 %vm386_vm0, %v367_v1 }
 0x121   : > { %v2584_v2 = vpop.f32.mrb[0].mxu0  ;;  %v2600_v3 = vpop.f32.mrb[0].mxu1 }
 0x122   : > { %v469_v4 = vpop.f32.mrb[1].mxu0  ;;  %v533_v5 = vpop.f32.mrb[1].mxu1 }
 0x123   : > { %v2585_v6 = vpop.f32.mrb[2].mxu0  ;;  %v2601_v7 = vpop.f32.mrb[2].mxu1 }
 0x124   : > { %v597_v8 = vpack.c.bf16 %v2585_v6, %v2584_v2  ;;  %v605_v9 = vpack.c.bf16 %v2601_v7, %v2600_v3  ;;  %v472_v10 = vpop.f32.mrb[3].mxu0  ;;  %v536_v11 = vpop.f32.mrb[3].mxu1 }
 0x125   : > { %v596_v12 = vpack.c.bf16 %v472_v10, %v469_v4  ;;  %v604_v13 = vpack.c.bf16 %v536_v11, %v533_v5 }
 0x126   : > { %613 = vst [vmem:[#allocation3 + $0x8] sm:$0xff] %v597_v8  ;;  %621 = vst [vmem:[#allocation3 + $0x48] sm:$0xff] %v605_v9 }
 0x127   : > { %612 = vst [vmem:[#allocation3] sm:$0xff] %v596_v12  ;;  %620 = vst [vmem:[#allocation3 + $0x40] sm:$0xff] %v604_v13 }
 0x129   : > { %v2588_v14 = vpop.f32.mrb[4].mxu0  ;;  %v2604_v15 = vpop.f32.mrb[4].mxu1 }
 0x12a   : > { %v485_v16 = vpop.f32.mrb[5].mxu0  ;;  %v549_v17 = vpop.f32.mrb[5].mxu1 }
 0x12b   : > { %v2589_v18 = vpop.f32.mrb[6].mxu0  ;;  %v2605_v19 = vpop.f32.mrb[6].mxu1 }
 0x12c   : > { %v599_v20 = vpack.c.bf16 %v2589_v18, %v2588_v14  ;;  %v607_v21 = vpack.c.bf16 %v2605_v19, %v2604_v15  ;;  %v488_v22 = vpop.f32.mrb[7].mxu0  ;;  %v552_v23 = vpop.f32.mrb[7].mxu1 }
 0x12d   : > { %v598_v24 = vpack.c.bf16 %v488_v22, %v485_v16  ;;  %v606_v25 = vpack.c.bf16 %v552_v23, %v549_v17 }
 0x12e   : > { %615 = vst [vmem:[#allocation3 + $0x18] sm:$0xff] %v599_v20  ;;  %623 = vst [vmem:[#allocation3 + $0x58] sm:$0xff] %v607_v21 }
 0x12f   : > { %614 = vst [vmem:[#allocation3 + $0x10] sm:$0xff] %v598_v24  ;;  %622 = vst [vmem:[#allocation3 + $0x50] sm:$0xff] %v606_v25 }
 0x131   : > { %v2592_v26 = vpop.f32.mrb[8].mxu0  ;;  %v2608_v27 = vpop.f32.mrb[8].mxu1 }
 0x132   : > { %v501_v28 = vpop.f32.mrb[9].mxu0  ;;  %v565_v29 = vpop.f32.mrb[9].mxu1 }
 0x133   : > { %v2593_v30 = vpop.f32.mrb[10].mxu0  ;;  %v2609_v31 = vpop.f32.mrb[10].mxu1 }
 0x134   : > { %v601_v32 = vpack.c.bf16 %v2593_v30, %v2592_v26  ;;  %v609_v33 = vpack.c.bf16 %v2609_v31, %v2608_v27  ;;  %v504_v34 = vpop.f32.mrb[11].mxu0  ;;  %v568_v35 = vpop.f32.mrb[11].mxu1 }
 0x135   : > { %v600_v36 = vpack.c.bf16 %v504_v34, %v501_v28  ;;  %v608_v37 = vpack.c.bf16 %v568_v35, %v565_v29 }
 0x136   : > { %617 = vst [vmem:[#allocation3 + $0x28] sm:$0xff] %v601_v32  ;;  %625 = vst [vmem:[#allocation3 + $0x68] sm:$0xff] %v609_v33 }
 0x137   : > { %616 = vst [vmem:[#allocation3 + $0x20] sm:$0xff] %v600_v36  ;;  %624 = vst [vmem:[#allocation3 + $0x60] sm:$0xff] %v608_v37 }
 0x139   : > { %v2596_v38 = vpop.f32.mrb[12].mxu0  ;;  %v2612_v39 = vpop.f32.mrb[12].mxu1 }
 0x13a   : > { %v517_v40 = vpop.f32.mrb[13].mxu0  ;;  %v581_v41 = vpop.f32.mrb[13].mxu1 }
 0x13b   : > { %v2597_v42 = vpop.f32.mrb[14].mxu0  ;;  %v2613_v43 = vpop.f32.mrb[14].mxu1 }
 0x13c   : > { %v603_v44 = vpack.c.bf16 %v2597_v42, %v2596_v38  ;;  %v611_v45 = vpack.c.bf16 %v2613_v43, %v2612_v39  ;;  %v520_v46 = vpop.f32.mrb[15].mxu0  ;;  %v584_v47 = vpop.f32.mrb[15].mxu1 }
 0x13d   : > { %v602_v48 = vpack.c.bf16 %v520_v46, %v517_v40  ;;  %v610_v49 = vpack.c.bf16 %v584_v47, %v581_v41 }
 0x13e   : > { %619 = vst [vmem:[#allocation3 + $0x38] sm:$0xff] %v603_v44  ;;  %627 = vst [vmem:[#allocation3 + $0x78] sm:$0xff] %v611_v45 }
 0x13f   : > { %618 = vst [vmem:[#allocation3 + $0x30] sm:$0xff] %v602_v48  ;;  %626 = vst [vmem:[#allocation3 + $0x70] sm:$0xff] %v610_v49 }
 0x140 PF: > { %v705_v50 = vld [vmem:[#allocation3 + $0x40] sm:$0xff]  ;;  %v706_v52 = vld [vmem:[#allocation3 + $0x48] sm:$0xff]  ;;  %v707_v54 = vld [vmem:[#allocation3 + $0x50] sm:$0xff]  ;;  %s3315_s27 = scalar_lea.vmem [#allocation2], %s2180_s16  ;;  %s676_s30 = sshra.s32 %s2180_s16, 4 }
 0x141   : > { %v697_v51 = vld [vmem:[#allocation3] sm:$0xff]  ;;  %2234 = vmatprep.subr.bf16.mxu0 %v705_v50  ;;  %2722 = vmatprep.subr.bf16.mxu1 %v705_v50  ;;  %v698_v53 = vld [vmem:[#allocation3 + $0x8] sm:$0xff]  ;;  %v699_v55 = vld [vmem:[#allocation3 + $0x10] sm:$0xff]  ;;  %s2201_s20 = sshll.u32 %s676_s30, 3  ;;  %p2202_p7 = scmp.ne.s32.totalorder %s3082_s9, 1 }
 0x142   : > { %2235 = vmatpush3.bf16.msra.mxu0 %v697_v51  ;;  %2730 = vmatpush3.bf16.msra.mxu1 %v697_v51  ;;  %v629_v56 = vld [vmem:[%s3149_s12 + $0x8] sm:$0xff]  ;;  %v631_v57 = vld [vmem:[%s3149_s12 + $0x18] sm:$0xff]  ;;  %v628_v62 = vld [vmem:[%s3149_s12] sm:$0xff]  ;;  %s3392_s16 = scalar_lea.vmem [#allocation4], %s2201_s20 }
 0x143   : > { %2236 = vmatprep.subr.bf16.mxu0 %v706_v52  ;;  %2723 = vmatprep.subr.bf16.mxu1 %v706_v52  ;;  %v708_v58 = vld [vmem:[#allocation3 + $0x58] sm:$0xff]  ;;  %v661_v59 = vpack.c.bf16 %v631_v57, %v629_v56  ;;  %v645_v60 = vld [vmem:[%s3149_s12 + $0x88] sm:$0xff]  ;;  %v630_v0 = vld [vmem:[%s3149_s12 + $0x10] sm:$0xff] }
 0x144   : > { %v647_v61 = vld [vmem:[%s3149_s12 + $0x98] sm:$0xff]  ;;  %v644_v1 = vld [vmem:[%s3149_s12 + $0x80] sm:$0xff]  ;;  %v646_v2 = vld [vmem:[%s3149_s12 + $0x90] sm:$0xff]  ;;  %v3318_v3 = vpack.c.bf16 %v630_v0, %v628_v62 }
 0x145   : > { %v669_v63 = vpack.c.bf16 %v647_v61, %v645_v60  ;;  %682 = vst [vmem:[%s3315_s27 + $0x8] sm:$0xff] %v661_v59  ;;  %752 = vmatprep.mubr.bf16.mxu0 %v661_v59  ;;  %v3320_v4 = vpack.c.bf16 %v646_v2, %v644_v1  ;;  %v633_v5 = vld [vmem:[%s3149_s12 + $0x28] sm:$0xff]  ;;  %v635_v6 = vld [vmem:[%s3149_s12 + $0x38] sm:$0xff]  ;;  %v632_v11 = vld [vmem:[%s3149_s12 + $0x20] sm:$0xff] }
 0x146   : > { %2237 = vmatpush3.bf16.msra.mxu0 %v698_v53  ;;  %2731 = vmatpush3.bf16.msra.mxu1 %v698_v53  ;;  %v649_v7 = vld [vmem:[%s3149_s12 + $0xa8] sm:$0xff]  ;;  %v700_v8 = vld [vmem:[#allocation3 + $0x18] sm:$0xff]  ;;  %v3326_v9 = vpack.c.bf16 %v635_v6, %v633_v5  ;;  %v634_v12 = vld [vmem:[%s3149_s12 + $0x30] sm:$0xff]  ;;  %681 = vst [vmem:[%s3315_s27] sm:$0xff] %v3318_v3 }
 0x147   : > { %2238 = vmatprep.subr.bf16.mxu0 %v707_v54  ;;  %2724 = vmatprep.subr.bf16.mxu1 %v707_v54  ;;  %690 = vst [vmem:[%s3315_s27 + $0x48] sm:$0xff] %v669_v63  ;;  %v651_v10 = vld [vmem:[%s3149_s12 + $0xb8] sm:$0xff]  ;;  %v709_v13 = vld [vmem:[#allocation3 + $0x60] sm:$0xff]  ;;  %689 = vst [vmem:[%s3315_s27 + $0x40] sm:$0xff] %v3320_v4  ;;  %v3337_v15 = vpack.c.bf16 %v634_v12, %v632_v11 }
 0x148   : > { %784 = vmatprep.mubr.bf16.mxu1 %v669_v63  ;;  %v3335_v14 = vpack.c.bf16 %v651_v10, %v649_v7  ;;  %v648_v16 = vld [vmem:[%s3149_s12 + $0xa0] sm:$0xff]  ;;  %v650_v17 = vld [vmem:[%s3149_s12 + $0xb0] sm:$0xff]  ;;  %v637_v18 = vld [vmem:[%s3149_s12 + $0x48] sm:$0xff]  ;;  %684 = vst [vmem:[%s3315_s27 + $0x18] sm:$0xff] %v3326_v9 }
 0x149   : > { %v3344_v19 = vpack.c.bf16 %v650_v17, %v648_v16  ;;  %v639_v20 = vld [vmem:[%s3149_s12 + $0x58] sm:$0xff]  ;;  %v653_v21 = vld [vmem:[%s3149_s12 + $0xc8] sm:$0xff]  ;;  %683 = vst [vmem:[%s3315_s27 + $0x10] sm:$0xff] %v3337_v15  ;;  %v636_v25 = vld [vmem:[%s3149_s12 + $0x40] sm:$0xff] }
 0x14a   : > { %2239 = vmatpush3.bf16.msra.mxu0 %v699_v55  ;;  %2732 = vmatpush3.bf16.msra.mxu1 %v699_v55  ;;  %v655_v22 = vld [vmem:[%s3149_s12 + $0xd8] sm:$0xff]  ;;  %692 = vst [vmem:[%s3315_s27 + $0x58] sm:$0xff] %v3335_v14  ;;  %v665_v23 = vpack.c.bf16 %v639_v20, %v637_v18  ;;  %v638_v26 = vld [vmem:[%s3149_s12 + $0x50] sm:$0xff]  ;;  %v652_v27 = vld [vmem:[%s3149_s12 + $0xc0] sm:$0xff] }
 0x14b   : > { %2240 = vmatprep.subr.bf16.mxu0 %v708_v58  ;;  %2725 = vmatprep.subr.bf16.mxu1 %v708_v58  ;;  %v673_v24 = vpack.c.bf16 %v655_v22, %v653_v21  ;;  %v701_v28 = vld [vmem:[#allocation3 + $0x20] sm:$0xff]  ;;  %691 = vst [vmem:[%s3315_s27 + $0x50] sm:$0xff] %v3344_v19  ;;  %v664_v29 = vpack.c.bf16 %v638_v26, %v636_v25  ;;  %v654_v30 = vld [vmem:[%s3149_s12 + $0xd0] sm:$0xff]  ;;  %v641_v31 = vld [vmem:[%s3149_s12 + $0x68] sm:$0xff] }
 0x14c   : > { %v643_v32 = vld [vmem:[%s3149_s12 + $0x78] sm:$0xff]  ;;  %686 = vst [vmem:[%s3315_s27 + $0x28] sm:$0xff] %v665_v23  ;;  %v672_v33 = vpack.c.bf16 %v654_v30, %v652_v27  ;;  %v657_v35 = vld [vmem:[%s3149_s12 + $0xe8] sm:$0xff]  ;;  %v640_v37 = vld [vmem:[%s3149_s12 + $0x60] sm:$0xff] }
 0x14d   : > { %694 = vst [vmem:[%s3315_s27 + $0x68] sm:$0xff] %v673_v24  ;;  %v667_v34 = vpack.c.bf16 %v643_v32, %v641_v31  ;;  %v659_v36 = vld [vmem:[%s3149_s12 + $0xf8] sm:$0xff]  ;;  %685 = vst [vmem:[%s3315_s27 + $0x20] sm:$0xff] %v664_v29  ;;  %v642_v39 = vld [vmem:[%s3149_s12 + $0x70] sm:$0xff] }
 0x14e   : > { %2241 = vmatpush3.bf16.msra.mxu0 %v700_v8  ;;  %2733 = vmatpush3.bf16.msra.mxu1 %v700_v8  ;;  %v675_v38 = vpack.c.bf16 %v659_v36, %v657_v35  ;;  %v656_v40 = vld [vmem:[%s3149_s12 + $0xe0] sm:$0xff]  ;;  %v658_v41 = vld [vmem:[%s3149_s12 + $0xf0] sm:$0xff]  ;;  %v710_v42 = vld [vmem:[#allocation3 + $0x68] sm:$0xff]  ;;  %693 = vst [vmem:[%s3315_s27 + $0x60] sm:$0xff] %v672_v33  ;;  %v666_v43 = vpack.c.bf16 %v642_v39, %v640_v37 }
 0x14f   : > { %2242 = vmatprep.subr.bf16.mxu0 %v709_v13  ;;  %2726 = vmatprep.subr.bf16.mxu1 %v709_v13  ;;  %688 = vst [vmem:[%s3315_s27 + $0x38] sm:$0xff] %v667_v34  ;;  %v674_v44 = vpack.c.bf16 %v658_v41, %v656_v40  ;;  %v702_v45 = vld [vmem:[#allocation3 + $0x28] sm:$0xff]  ;;  %v711_v46 = vld [vmem:[#allocation3 + $0x70] sm:$0xff]  ;;  %v712_v48 = vld [vmem:[#allocation3 + $0x78] sm:$0xff] }
 0x150   : > { %696 = vst [vmem:[%s3315_s27 + $0x78] sm:$0xff] %v675_v38  ;;  %687 = vst [vmem:[%s3315_s27 + $0x30] sm:$0xff] %v666_v43  ;;  %v703_v47 = vld [vmem:[#allocation3 + $0x30] sm:$0xff]  ;;  %v704_v49 = vld [vmem:[#allocation3 + $0x38] sm:$0xff] }
 0x151   : > { %695 = vst [vmem:[%s3315_s27 + $0x70] sm:$0xff] %v674_v44  ;;  %v3384_v52 = vld [vmem:[%s4107_s3] ss:$0 sm:$0xff] }
 0x152   : > { %2243 = vmatpush3.bf16.msra.mxu0 %v701_v28  ;;  %2734 = vmatpush3.bf16.msra.mxu1 %v701_v28 }
 0x153   : > { %2244 = vmatprep.subr.bf16.mxu0 %v710_v42  ;;  %2727 = vmatprep.subr.bf16.mxu1 %v710_v42 }
 0x156   : > { %2245 = vmatpush3.bf16.msra.mxu0 %v702_v45  ;;  %2735 = vmatpush3.bf16.msra.mxu1 %v702_v45 }
 0x157   : > { %2246 = vmatprep.subr.bf16.mxu0 %v711_v46  ;;  %2728 = vmatprep.subr.bf16.mxu1 %v711_v46 }
 0x15a   : > { %2247 = vmatpush3.bf16.msra.mxu0 %v703_v47  ;;  %2736 = vmatpush3.bf16.msra.mxu1 %v703_v47 }
 0x15b   : > { %2248 = vmatprep.subr.bf16.mxu0 %v712_v48  ;;  %2729 = vmatprep.subr.bf16.mxu1 %v712_v48 }
 0x15e   : > { %2249 = vmatpush3.bf16.msra.mxu0 %v704_v49  ;;  %2737 = vmatpush3.bf16.msra.mxu1 %v704_v49 }
 0x161   : > { %753 = vmatmul.mubr.bf16.vlgmr.msra.gmra.mrb[0].mxu0 %v3318_v3  ;;  %785 = vmatmul.mubr.bf16.vlgmr.msra.gmra.mrb[0].mxu1 %v3320_v4 }
 0x162   : > { %760 = vmatprep.mubr.bf16.mxu0 %v3326_v9  ;;  %792 = vmatprep.mubr.bf16.mxu1 %v3335_v14 }
 0x169   : > { %761 = vmatmul.mubr.bf16.gmra.mrb[4].mxu0 %v3337_v15  ;;  %793 = vmatmul.mubr.bf16.gmra.mrb[4].mxu1 %v3344_v19 }
 0x16a   : > { %768 = vmatprep.mubr.bf16.mxu0 %v665_v23  ;;  %800 = vmatprep.mubr.bf16.mxu1 %v673_v24 }
 0x171   : > { %769 = vmatmul.mubr.bf16.gmra.mrb[8].mxu0 %v664_v29  ;;  %801 = vmatmul.mubr.bf16.gmra.mrb[8].mxu1 %v672_v33 }
 0x172   : > { %776 = vmatprep.mubr.bf16.mxu0 %v667_v34  ;;  %808 = vmatprep.mubr.bf16.mxu1 %v675_v38 }
 0x179   : > { %777 = vmatmul.mubr.bf16.gmra.mrb[12].mxu0 %v666_v43  ;;  %809 = vmatmul.mubr.bf16.gmra.mrb[12].mxu1 %v674_v44 }
 0x234   : > { %v2250_v50 = vpop.f32.mrb[0].mxu0  ;;  %v2274_v51 = vpop.f32.mrb[0].mxu1 }
 0x235   : > { %v2251_v53 = vpop.f32.mrb[1].mxu0  ;;  %v2275_v54 = vpop.f32.mrb[1].mxu1 }
 0x236   : > { %v2252_v55 = vadd.f32 %v2251_v53, %v2250_v50  ;;  %v2276_v56 = vadd.f32 %v2275_v54, %v2274_v51  ;;  %v2253_v57 = vpop.f32.mrb[2].mxu0  ;;  %v2277_v58 = vpop.f32.mrb[2].mxu1 }
 0x237   : > { %v2254_v59 = vpop.f32.mrb[3].mxu0  ;;  %v2278_v60 = vpop.f32.mrb[3].mxu1 }
 0x238   : > { %v755_v61 = vadd.f32 %v2252_v55, %v3384_v52  ;;  %v787_v62 = vadd.f32 %v2276_v56, %v3384_v52  ;;  %v2255_v63 = vadd.f32 %v2254_v59, %v2253_v57  ;;  %v2279_v0 = vadd.f32 %v2278_v60, %v2277_v58 }
 0x23a   : > { %v758_v1 = vadd.f32 %v2255_v63, %v3384_v52  ;;  %v790_v2 = vadd.f32 %v2279_v0, %v3384_v52  ;;  %v817_v3 = vmax.f32 %v755_v61, 0.0  ;;  %v825_v4 = vmax.f32 %v787_v62, 0.0 }
 0x23c   : > { %v818_v5 = vmax.f32 %v758_v1, 0.0  ;;  %v826_v6 = vmax.f32 %v790_v2, 0.0  ;;  %v2256_v7 = vpop.f32.mrb[4].mxu0  ;;  %v2280_v8 = vpop.f32.mrb[4].mxu1 }
 0x23d   : > { %v2257_v9 = vpop.f32.mrb[5].mxu0  ;;  %v2281_v10 = vpop.f32.mrb[5].mxu1 }
 0x23e   : > { %v833_v11 = vpack.c.bf16 %v818_v5, %v817_v3  ;;  %v837_v12 = vpack.c.bf16 %v826_v6, %v825_v4  ;;  %v2258_v13 = vadd.f32 %v2257_v9, %v2256_v7  ;;  %v2282_v14 = vadd.f32 %v2281_v10, %v2280_v8  ;;  %v2259_v15 = vpop.f32.mrb[6].mxu0  ;;  %v2283_v16 = vpop.f32.mrb[6].mxu1 }
 0x23f   : > { %v2260_v17 = vpop.f32.mrb[7].mxu0  ;;  %v2284_v18 = vpop.f32.mrb[7].mxu1 }
 0x240   : > { %843 = vst [vmem:[%s3392_s16] sm:$0xff] %v833_v11  ;;  %847 = vst [vmem:[%s3392_s16 + $0x20] sm:$0xff] %v837_v12  ;;  %v763_v19 = vadd.f32 %v2258_v13, %v3384_v52  ;;  %v795_v20 = vadd.f32 %v2282_v14, %v3384_v52  ;;  %v2261_v21 = vadd.f32 %v2260_v17, %v2259_v15 }
 0x241   : > { %v2285_v22 = vadd.f32 %v2284_v18, %v2283_v16 }
 0x242   : > { %v766_v23 = vadd.f32 %v2261_v21, %v3384_v52  ;;  %v819_v25 = vmax.f32 %v763_v19, 0.0  ;;  %v827_v26 = vmax.f32 %v795_v20, 0.0 }
 0x243   : > { %v798_v24 = vadd.f32 %v2285_v22, %v3384_v52 }
 0x244   : > { %v820_v27 = vmax.f32 %v766_v23, 0.0  ;;  %v2262_v29 = vpop.f32.mrb[8].mxu0  ;;  %v2286_v30 = vpop.f32.mrb[8].mxu1 }
 0x245   : > { %v828_v28 = vmax.f32 %v798_v24, 0.0  ;;  %v2263_v31 = vpop.f32.mrb[9].mxu0  ;;  %v2287_v32 = vpop.f32.mrb[9].mxu1 }
 0x246   : > { %v834_v33 = vpack.c.bf16 %v820_v27, %v819_v25  ;;  %v2264_v35 = vadd.f32 %v2263_v31, %v2262_v29  ;;  %v2288_v36 = vadd.f32 %v2287_v32, %v2286_v30  ;;  %v2265_v37 = vpop.f32.mrb[10].mxu0  ;;  %v2289_v38 = vpop.f32.mrb[10].mxu1 }
 0x247   : > { %v838_v34 = vpack.c.bf16 %v828_v28, %v827_v26  ;;  %v2266_v39 = vpop.f32.mrb[11].mxu0  ;;  %v2290_v40 = vpop.f32.mrb[11].mxu1 }
 0x248   : > { %844 = vst [vmem:[%s3392_s16 + $0x8] sm:$0xff] %v834_v33  ;;  %v771_v41 = vadd.f32 %v2264_v35, %v3384_v52  ;;  %v803_v42 = vadd.f32 %v2288_v36, %v3384_v52  ;;  %v2267_v43 = vadd.f32 %v2266_v39, %v2265_v37  ;;  %v2291_v44 = vadd.f32 %v2290_v40, %v2289_v38 }
 0x249   : > { %848 = vst [vmem:[%s3392_s16 + $0x28] sm:$0xff] %v838_v34 }
 0x24a   : > { %v774_v45 = vadd.f32 %v2267_v43, %v3384_v52  ;;  %v806_v46 = vadd.f32 %v2291_v44, %v3384_v52  ;;  %v821_v47 = vmax.f32 %v771_v41, 0.0  ;;  %v829_v48 = vmax.f32 %v803_v42, 0.0 }
 0x24c   : > { %v822_v49 = vmax.f32 %v774_v45, 0.0  ;;  %v830_v50 = vmax.f32 %v806_v46, 0.0  ;;  %v2268_v51 = vpop.f32.mrb[12].mxu0  ;;  %v2292_v53 = vpop.f32.mrb[12].mxu1 }
 0x24d   : > { %v2269_v54 = vpop.f32.mrb[13].mxu0  ;;  %v2293_v55 = vpop.f32.mrb[13].mxu1 }
 0x24e   : > { %v835_v56 = vpack.c.bf16 %v822_v49, %v821_v47  ;;  %v839_v57 = vpack.c.bf16 %v830_v50, %v829_v48  ;;  %v2270_v58 = vadd.f32 %v2269_v54, %v2268_v51  ;;  %v2294_v59 = vadd.f32 %v2293_v55, %v2292_v53  ;;  %v2271_v60 = vpop.f32.mrb[14].mxu0  ;;  %v2295_v61 = vpop.f32.mrb[14].mxu1 }
 0x24f   : > { %v2272_v62 = vpop.f32.mrb[15].mxu0  ;;  %v2296_v63 = vpop.f32.mrb[15].mxu1 }
 0x250   : > { %845 = vst [vmem:[%s3392_s16 + $0x10] sm:$0xff] %v835_v56  ;;  %849 = vst [vmem:[%s3392_s16 + $0x30] sm:$0xff] %v839_v57  ;;  %v779_v0 = vadd.f32 %v2270_v58, %v3384_v52  ;;  %v811_v1 = vadd.f32 %v2294_v59, %v3384_v52  ;;  %v2273_v2 = vadd.f32 %v2272_v62, %v2271_v60 }
 0x251   : > { %v2297_v3 = vadd.f32 %v2296_v63, %v2295_v61 }
 0x252   : > { %v782_v4 = vadd.f32 %v2273_v2, %v3384_v52  ;;  %v823_v6 = vmax.f32 %v779_v0, 0.0  ;;  %v831_v7 = vmax.f32 %v811_v1, 0.0 }
 0x253   : > { %v814_v5 = vadd.f32 %v2297_v3, %v3384_v52  ;;  %854 = sbr.rel (%p2202_p7) target bundleno = 2143 (0x85f), region = 64 }
 0x254   : > { %v824_v8 = vmax.f32 %v782_v4, 0.0 }
 0x255   : > { %v832_v9 = vmax.f32 %v814_v5, 0.0 }
 0x256   : > { %v836_v10 = vpack.c.bf16 %v824_v8, %v823_v6 }
 0x257   : > { %v840_v11 = vpack.c.bf16 %v832_v9, %v831_v7 }
 0x258   : > { %846 = vst [vmem:[%s3392_s16 + $0x18] sm:$0xff] %v836_v10 }
 0x259   : > { %850 = vst [vmem:[%s3392_s16 + $0x38] sm:$0xff] %v840_v11 }
 0x25a   : > { %v887_v12 = vld [vmem:[%s4108_s4] sm:$0xff]  ;;  %v888_v13 = vld [vmem:[%s4108_s4 + $0x8] sm:$0xff]  ;;  %v889_v52 = vld [vmem:[%s4108_s4 + $0x10] sm:$0xff] }
 0x25b   : > { %v903_v14 = vpack.c.bf16 %v888_v13, %v887_v12  ;;  %v890_v15 = vld [vmem:[%s4108_s4 + $0x18] sm:$0xff]  ;;  %v891_v17 = vld [vmem:[%s4108_s4 + $0x20] sm:$0xff]  ;;  %v892_v18 = vld [vmem:[%s4108_s4 + $0x28] sm:$0xff] }
 0x25c   : > { %v904_v16 = vpack.c.bf16 %v890_v15, %v889_v52  ;;  %v905_v19 = vpack.c.bf16 %v892_v18, %v891_v17  ;;  %v893_v21 = vld [vmem:[%s4108_s4 + $0x30] sm:$0xff]  ;;  %v894_v22 = vld [vmem:[%s4108_s4 + $0x38] sm:$0xff]  ;;  %v895_v24 = vld [vmem:[%s4108_s4 + $0x40] sm:$0xff] }
 0x25d   : > { %2614 = vmatprep.subr.bf16.mxu1 %v903_v14  ;;  %v906_v23 = vpack.c.bf16 %v894_v22, %v893_v21  ;;  %v896_v25 = vld [vmem:[%s4108_s4 + $0x48] sm:$0xff]  ;;  %v897_v27 = vld [vmem:[%s4108_s4 + $0x50] sm:$0xff]  ;;  %v898_v28 = vld [vmem:[%s4108_s4 + $0x58] sm:$0xff] }
 0x25e   : > { %2615 = vmatpush3.bf16.msra.mxu1 %v903_v14  ;;  %v907_v26 = vpack.c.bf16 %v896_v25, %v895_v24  ;;  %v908_v29 = vpack.c.bf16 %v898_v28, %v897_v27  ;;  %v899_v30 = vld [vmem:[%s4108_s4 + $0x60] sm:$0xff]  ;;  %v900_v31 = vld [vmem:[%s4108_s4 + $0x68] sm:$0xff]  ;;  %v901_v33 = vld [vmem:[%s4108_s4 + $0x70] sm:$0xff] }
 0x25f   : > { %2616 = vmatprep.subr.bf16.mxu1 %v904_v16  ;;  %v909_v32 = vpack.c.bf16 %v900_v31, %v899_v30  ;;  %v902_v34 = vld [vmem:[%s4108_s4 + $0x78] sm:$0xff]  ;;  %v3463_v51 = vld [vmem:[#allocation2 + $0x8] sm:$0xff] }
 0x260   : > { %v935_v20 = vld [vmem:[#allocation4] sm:$0xff]  ;;  %v910_v35 = vpack.c.bf16 %v902_v34, %v901_v33  ;;  %v936_v36 = vld [vmem:[#allocation4 + $0x8] sm:$0xff]  ;;  %v937_v37 = vld [vmem:[#allocation4 + $0x10] sm:$0xff] }
 0x261   : > { %2630 = vmatprep.mubr.bf16.mxu1 %v935_v20  ;;  %v938_v38 = vld [vmem:[#allocation4 + $0x18] sm:$0xff]  ;;  %v939_v39 = vld [vmem:[#allocation4 + $0x20] sm:$0xff]  ;;  %v940_v40 = vld [vmem:[#allocation4 + $0x28] sm:$0xff] }
 0x262   : > { %2617 = vmatpush3.bf16.msra.mxu1 %v904_v16  ;;  %v941_v41 = vld [vmem:[#allocation4 + $0x30] sm:$0xff]  ;;  %v942_v42 = vld [vmem:[#allocation4 + $0x38] sm:$0xff]  ;;  %v943_v43 = vld [vmem:[#allocation4 + $0x40] sm:$0xff] }
 0x263   : > { %2618 = vmatprep.subr.bf16.mxu1 %v905_v19  ;;  %v944_v44 = vld [vmem:[#allocation4 + $0x48] sm:$0xff]  ;;  %v945_v45 = vld [vmem:[#allocation4 + $0x50] sm:$0xff]  ;;  %v946_v46 = vld [vmem:[#allocation4 + $0x58] sm:$0xff] }
 0x264   : > { %v947_v47 = vld [vmem:[#allocation4 + $0x60] sm:$0xff]  ;;  %v948_v48 = vld [vmem:[#allocation4 + $0x68] sm:$0xff]  ;;  %v949_v49 = vld [vmem:[#allocation4 + $0x70] sm:$0xff] }
 0x265   : > { %v950_v50 = vld [vmem:[#allocation4 + $0x78] sm:$0xff] }
 0x266   : > { %2619 = vmatpush3.bf16.msra.mxu1 %v905_v19 }
 0x267   : > { %2620 = vmatprep.subr.bf16.mxu1 %v906_v23 }
 0x26a   : > { %2621 = vmatpush3.bf16.msra.mxu1 %v906_v23 }
 0x26b   : > { %2622 = vmatprep.subr.bf16.mxu1 %v907_v26 }
 0x26e   : > { %2623 = vmatpush3.bf16.msra.mxu1 %v907_v26 }
 0x26f   : > { %2624 = vmatprep.subr.bf16.mxu1 %v908_v29 }
 0x272   : > { %2625 = vmatpush3.bf16.msra.mxu1 %v908_v29 }
 0x273   : > { %2626 = vmatprep.subr.bf16.mxu1 %v909_v32 }
 0x276   : > { %2627 = vmatpush3.bf16.msra.mxu1 %v909_v32 }
 0x277   : > { %2628 = vmatprep.subr.bf16.mxu1 %v910_v35 }
 0x27a   : > { %2629 = vmatpush3.bf16.msra.mxu1 %v910_v35 }
 0x27d   : > { %2631 = vmatmul.mubr.bf16.vlgmr.msra.gmra.mrb[0].mxu1 %v936_v36  ;;  %v911_v36 = vld [vmem:[%s4110_s6] sm:$0xff] }
 0x27e   : > { %2634 = vmatprep.mubr.bf16.mxu1 %v937_v37  ;;  %v912_v37 = vld [vmem:[%s4110_s6 + $0x8] sm:$0xff] }
 0x285   : > { %2635 = vmatmul.mubr.bf16.gmra.mrb[4].mxu1 %v938_v38  ;;  %v913_v38 = vld [vmem:[%s4110_s6 + $0x10] sm:$0xff] }
 0x286   : > { %2638 = vmatprep.mubr.bf16.mxu1 %v939_v39  ;;  %v927_v39 = vpack.c.bf16 %v912_v37, %v911_v36 }
 0x288   : > { %2662 = vmatprep.subr.bf16.mxu0 %v927_v39 }
 0x289   : > { %2663 = vmatpush3.bf16.msra.mxu0 %v927_v39 }
 0x28d   : > { %2639 = vmatmul.mubr.bf16.gmra.mrb[8].mxu1 %v940_v40  ;;  %v914_v40 = vld [vmem:[%s4110_s6 + $0x18] sm:$0xff] }
 0x28e   : > { %2642 = vmatprep.mubr.bf16.mxu1 %v941_v41  ;;  %v928_v41 = vpack.c.bf16 %v914_v40, %v913_v38 }
 0x290   : > { %2664 = vmatprep.subr.bf16.mxu0 %v928_v41 }
 0x291   : > { %2665 = vmatpush3.bf16.msra.mxu0 %v928_v41 }
 0x295   : > { %2643 = vmatmul.mubr.bf16.gmra.mrb[12].mxu1 %v942_v42  ;;  %v915_v42 = vld [vmem:[%s4110_s6 + $0x20] sm:$0xff] }
 0x296   : > { %2646 = vmatprep.mubr.bf16.mxu1 %v943_v43  ;;  %v916_v43 = vld [vmem:[%s4110_s6 + $0x28] sm:$0xff] }
 0x29d   : > { %2647 = vmatmul.mubr.bf16.gmra.mrb[16].mxu1 %v944_v44  ;;  %v3484_v44 = vld [vmem:[#allocation2] sm:$0xff] }
 0x29e   : > { %2650 = vmatprep.mubr.bf16.mxu1 %v945_v45  ;;  %v929_v45 = vpack.c.bf16 %v916_v43, %v915_v42 }
 0x2a0   : > { %2666 = vmatprep.subr.bf16.mxu0 %v929_v45 }
 0x2a1   : > { %2667 = vmatpush3.bf16.msra.mxu0 %v929_v45 }
 0x2a5   : > { %2651 = vmatmul.mubr.bf16.gmra.mrb[20].mxu1 %v946_v46  ;;  %v3486_v46 = vld [vmem:[#allocation2 + $0x18] sm:$0xff] }
 0x2a6   : > { %2654 = vmatprep.mubr.bf16.mxu1 %v947_v47  ;;  %v917_v47 = vld [vmem:[%s4110_s6 + $0x30] sm:$0xff] }
 0x2ad   : > { %2655 = vmatmul.mubr.bf16.gmra.mrb[24].mxu1 %v948_v48  ;;  %v918_v48 = vld [vmem:[%s4110_s6 + $0x38] sm:$0xff] }
 0x2ae   : > { %2658 = vmatprep.mubr.bf16.mxu1 %v949_v49  ;;  %v930_v49 = vpack.c.bf16 %v918_v48, %v917_v47 }
 0x2b0   : > { %2668 = vmatprep.subr.bf16.mxu0 %v930_v49 }
 0x2b1   : > { %2669 = vmatpush3.bf16.msra.mxu0 %v930_v49 }
 0x2b5   : > { %2659 = vmatmul.mubr.bf16.gmra.mrb[28].mxu1 %v950_v50  ;;  %v3496_v50 = vld [vmem:[#allocation2 + $0x10] sm:$0xff] }
 0x2b6   : > { %1167 = vmatprep.mubr.bf16.mxu1 %v3463_v51 }
 0x350   : > { %v2632_v53 = vpop.f32.mrb[0].mxu1 }
 0x351   : > { %v985_v54 = vpop.f32.mrb[1].mxu1 }
 0x352   : > { %v2633_v55 = vpop.f32.mrb[2].mxu1 }
 0x353   : > { %v1113_v56 = vpack.c.bf16 %v2633_v55, %v2632_v53  ;;  %v988_v57 = vpop.f32.mrb[3].mxu1  ;;  %v3498_v53 = vld [vmem:[#allocation2 + $0x28] sm:$0xff]  ;;  %v3504_v55 = vld [vmem:[#allocation2 + $0x38] sm:$0xff] }
 0x354   : > { %v1112_v58 = vpack.c.bf16 %v988_v57, %v985_v54  ;;  %v3502_v54 = vld [vmem:[#allocation2 + $0x20] sm:$0xff]  ;;  %v3510_v57 = vld [vmem:[#allocation2 + $0x48] sm:$0xff] }
 0x358   : > { %v2636_v59 = vpop.f32.mrb[4].mxu1 }
 0x359   : > { %v1001_v60 = vpop.f32.mrb[5].mxu1 }
 0x35a   : > { %v2637_v61 = vpop.f32.mrb[6].mxu1 }
 0x35b   : > { %v1115_v62 = vpack.c.bf16 %v2637_v61, %v2636_v59  ;;  %v1004_v63 = vpop.f32.mrb[7].mxu1  ;;  %v3516_v59 = vld [vmem:[#allocation2 + $0x58] sm:$0xff]  ;;  %v3522_v61 = vld [vmem:[#allocation2 + $0x68] sm:$0xff] }
 0x35c   : > { %v1114_v0 = vpack.c.bf16 %v1004_v63, %v1001_v60  ;;  %v3520_v60 = vld [vmem:[#allocation2 + $0x50] sm:$0xff]  ;;  %v3528_v63 = vld [vmem:[#allocation2 + $0x78] sm:$0xff] }
 0x360   : > { %v2640_v1 = vpop.f32.mrb[8].mxu1 }
 0x361   : > { %v1017_v2 = vpop.f32.mrb[9].mxu1 }
 0x362   : > { %v2641_v3 = vpop.f32.mrb[10].mxu1 }
 0x363   : > { %v1117_v4 = vpack.c.bf16 %v2641_v3, %v2640_v1  ;;  %v1020_v5 = vpop.f32.mrb[11].mxu1  ;;  %v3534_v1 = vld [vmem:[#allocation2 + $0x88] sm:$0xff]  ;;  %v3540_v3 = vld [vmem:[#allocation2 + $0x98] sm:$0xff] }
 0x364   : > { %v1116_v6 = vpack.c.bf16 %v1020_v5, %v1017_v2  ;;  %v3538_v2 = vld [vmem:[#allocation2 + $0x80] sm:$0xff]  ;;  %v3546_v5 = vld [vmem:[#allocation2 + $0xa8] sm:$0xff] }
 0x368   : > { %v2644_v7 = vpop.f32.mrb[12].mxu1 }
 0x369   : > { %v1033_v8 = vpop.f32.mrb[13].mxu1 }
 0x36a   : > { %v2645_v9 = vpop.f32.mrb[14].mxu1 }
 0x36b   : > { %v1119_v10 = vpack.c.bf16 %v2645_v9, %v2644_v7  ;;  %v1036_v11 = vpop.f32.mrb[15].mxu1  ;;  %v3552_v7 = vld [vmem:[#allocation2 + $0xb8] sm:$0xff]  ;;  %v920_v9 = vld [vmem:[%s4110_s6 + $0x48] sm:$0xff] }
 0x36c   : > { %v1118_v12 = vpack.c.bf16 %v1036_v11, %v1033_v8  ;;  %v919_v8 = vld [vmem:[%s4110_s6 + $0x40] sm:$0xff] }
 0x36d   : > { %v931_v11 = vpack.c.bf16 %v920_v9, %v919_v8 }
 0x36f   : > { %2670 = vmatprep.subr.bf16.mxu0 %v931_v11 }
 0x370   : > { %v2648_v13 = vpop.f32.mrb[16].mxu1  ;;  %2671 = vmatpush3.bf16.msra.mxu0 %v931_v11 }
 0x371   : > { %v1049_v52 = vpop.f32.mrb[17].mxu1 }
 0x372   : > { %v2649_v14 = vpop.f32.mrb[18].mxu1 }
 0x373   : > { %v1121_v15 = vpack.c.bf16 %v2649_v14, %v2648_v13  ;;  %v1052_v16 = vpop.f32.mrb[19].mxu1  ;;  %v921_v13 = vld [vmem:[%s4110_s6 + $0x50] sm:$0xff] }
 0x374   : > { %v1120_v17 = vpack.c.bf16 %v1052_v16, %v1049_v52  ;;  %v922_v52 = vld [vmem:[%s4110_s6 + $0x58] sm:$0xff]  ;;  %v924_v16 = vld [vmem:[%s4110_s6 + $0x68] sm:$0xff] }
 0x375   : > { %v932_v14 = vpack.c.bf16 %v922_v52, %v921_v13 }
 0x376   : > { %2322 = vmatprep.subr.bf16.mxu1 %v1120_v17  ;;  %v3580_v17 = vld [vmem:[#allocation2 + $0xc0] sm:$0xff] }
 0x377   : > { %2323 = vmatpush3.bf16.msra.mxu1 %v1112_v58  ;;  %v3514_v58 = vld [vmem:[#allocation2 + $0x40] sm:$0xff]  ;;  %2672 = vmatprep.subr.bf16.mxu0 %v932_v14 }
 0x378   : > { %v2652_v18 = vpop.f32.mrb[20].mxu1  ;;  %2324 = vmatprep.subr.bf16.mxu1 %v1121_v15  ;;  %2673 = vmatpush3.bf16.msra.mxu0 %v932_v14  ;;  %v923_v15 = vld [vmem:[%s4110_s6 + $0x60] sm:$0xff] }
 0x379   : > { %v1065_v19 = vpop.f32.mrb[21].mxu1 }
 0x37a   : > { %v2653_v20 = vpop.f32.mrb[22].mxu1 }
 0x37b   : > { %v1123_v21 = vpack.c.bf16 %v2653_v20, %v2652_v18  ;;  %v1068_v22 = vpop.f32.mrb[23].mxu1  ;;  %2325 = vmatpush3.bf16.msra.mxu1 %v1113_v56  ;;  %v3508_v56 = vld [vmem:[#allocation2 + $0x30] sm:$0xff]  ;;  %v933_v18 = vpack.c.bf16 %v924_v16, %v923_v15 }
 0x37c   : > { %v1122_v23 = vpack.c.bf16 %v1068_v22, %v1065_v19  ;;  %v3582_v19 = vld [vmem:[#allocation2 + $0xd8] sm:$0xff]  ;;  %v925_v20 = vld [vmem:[%s4110_s6 + $0x70] sm:$0xff] }
 0x37d   : > { %2674 = vmatprep.subr.bf16.mxu0 %v933_v18 }
 0x37e   : > { %2326 = vmatprep.subr.bf16.mxu1 %v1122_v23  ;;  %2675 = vmatpush3.bf16.msra.mxu0 %v933_v18  ;;  %v3592_v23 = vld [vmem:[#allocation2 + $0xd0] sm:$0xff] }
 0x37f   : > { %2327 = vmatpush3.bf16.msra.mxu1 %v1114_v0  ;;  %v3532_v0 = vld [vmem:[#allocation2 + $0x70] sm:$0xff] }
 0x380   : > { %v2656_v24 = vpop.f32.mrb[24].mxu1  ;;  %2328 = vmatprep.subr.bf16.mxu1 %v1123_v21  ;;  %v926_v21 = vld [vmem:[%s4110_s6 + $0x78] sm:$0xff] }
 0x381   : > { %v1081_v25 = vpop.f32.mrb[25].mxu1  ;;  %v934_v22 = vpack.c.bf16 %v926_v21, %v925_v20 }
 0x382   : > { %v2657_v26 = vpop.f32.mrb[26].mxu1 }
 0x383   : > { %v1125_v27 = vpack.c.bf16 %v2657_v26, %v2656_v24  ;;  %v1084_v28 = vpop.f32.mrb[27].mxu1  ;;  %2329 = vmatpush3.bf16.msra.mxu1 %v1115_v62  ;;  %v3526_v62 = vld [vmem:[#allocation2 + $0x60] sm:$0xff]  ;;  %2676 = vmatprep.subr.bf16.mxu0 %v934_v22  ;;  %v3594_v24 = vld [vmem:[#allocation2 + $0xe8] sm:$0xff]  ;;  %v3600_v26 = vld [vmem:[#allocation2 + $0xf8] sm:$0xff] }
 0x384   : > { %v1124_v29 = vpack.c.bf16 %v1084_v28, %v1081_v25  ;;  %2677 = vmatpush3.bf16.msra.mxu0 %v934_v22  ;;  %v3598_v25 = vld [vmem:[#allocation2 + $0xe0] sm:$0xff] }
 0x386   : > { %2330 = vmatprep.subr.bf16.mxu1 %v1124_v29 }
 0x387   : > { %2331 = vmatpush3.bf16.msra.mxu1 %v1116_v6  ;;  %v3550_v6 = vld [vmem:[#allocation2 + $0xa0] sm:$0xff] }
 0x388   : > { %v2660_v30 = vpop.f32.mrb[28].mxu1  ;;  %2332 = vmatprep.subr.bf16.mxu1 %v1125_v27  ;;  %v3604_v27 = vld [vmem:[#allocation2 + $0xf0] sm:$0xff] }
 0x389   : > { %v1097_v31 = vpop.f32.mrb[29].mxu1 }
 0x38a   : > { %v2661_v32 = vpop.f32.mrb[30].mxu1 }
 0x38b   : > { %v1127_v33 = vpack.c.bf16 %v2661_v32, %v2660_v30  ;;  %v1100_v34 = vpop.f32.mrb[31].mxu1  ;;  %2333 = vmatpush3.bf16.msra.mxu1 %v1117_v4  ;;  %v3544_v4 = vld [vmem:[#allocation2 + $0x90] sm:$0xff]  ;;  %v3610_v30 = vld [vmem:[%s4109_s5] ss:$0 sm:$0xff] }
 0x38c   : > { %v1126_v35 = vpack.c.bf16 %v1100_v34, %v1097_v31 }
 0x38e   : > { %2334 = vmatprep.subr.bf16.mxu1 %v1126_v35 }
 0x38f   : > { %2335 = vmatpush3.bf16.msra.mxu1 %v1118_v12  ;;  %v3564_v12 = vld [vmem:[#allocation2 + $0xc8] sm:$0xff] }
 0x390   : > { %2336 = vmatprep.subr.bf16.mxu1 %v1127_v33 }
 0x393   : > { %2337 = vmatpush3.bf16.msra.mxu1 %v1119_v10  ;;  %v3562_v10 = vld [vmem:[#allocation2 + $0xb0] sm:$0xff] }
 0x396   : > { %1168 = vmatmul.mubr.bf16.vlgmr.msra.gmra.mrb[32].mxu1 %v3484_v44 }
 0x397   : > { %1175 = vmatprep.mubr.bf16.mxu1 %v3486_v46 }
 0x39e   : > { %1176 = vmatmul.mubr.bf16.gmra.mrb[36].mxu1 %v3496_v50 }
 0x39f   : > { %1183 = vmatprep.mubr.bf16.mxu1 %v3498_v53 }
 0x3a6   : > { %1184 = vmatmul.mubr.bf16.gmra.mrb[40].mxu1 %v3502_v54 }
 0x3a7   : > { %1191 = vmatprep.mubr.bf16.mxu1 %v3504_v55 }
 0x3ae   : > { %1192 = vmatmul.mubr.bf16.gmra.mrb[44].mxu1 %v3508_v56 }
 0x3af   : > { %1199 = vmatprep.mubr.bf16.mxu1 %v3510_v57 }
 0x3b6   : > { %1200 = vmatmul.mubr.bf16.gmra.mrb[48].mxu1 %v3514_v58 }
 0x3b7   : > { %1207 = vmatprep.mubr.bf16.mxu1 %v3516_v59 }
 0x3be   : > { %1208 = vmatmul.mubr.bf16.gmra.mrb[52].mxu1 %v3520_v60 }
 0x3bf   : > { %1215 = vmatprep.mubr.bf16.mxu1 %v3522_v61 }
 0x3c6   : > { %1216 = vmatmul.mubr.bf16.gmra.mrb[56].mxu1 %v3526_v62 }
 0x3c7   : > { %1223 = vmatprep.mubr.bf16.mxu1 %v3528_v63 }
 0x3ce   : > { %1224 = vmatmul.mubr.bf16.gmra.mrb[60].mxu1 %v3532_v0 }
 0x3cf   : > { %1231 = vmatprep.mubr.bf16.mxu1 %v3534_v1 }
 0x3d6   : > { %1232 = vmatmul.mubr.bf16.gmra.mrb[64].mxu1 %v3538_v2 }
 0x3d7   : > { %1239 = vmatprep.mubr.bf16.mxu1 %v3540_v3 }
 0x3de   : > { %1240 = vmatmul.mubr.bf16.gmra.mrb[68].mxu1 %v3544_v4 }
 0x3df   : > { %1247 = vmatprep.mubr.bf16.mxu1 %v3546_v5 }
 0x3e6   : > { %1248 = vmatmul.mubr.bf16.gmra.mrb[72].mxu1 %v3550_v6 }
 0x3e7   : > { %1255 = vmatprep.mubr.bf16.mxu1 %v3552_v7 }
 0x3ee   : > { %1256 = vmatmul.mubr.bf16.gmra.mrb[76].mxu1 %v3562_v10 }
 0x3ef   : > { %1263 = vmatprep.mubr.bf16.mxu1 %v3564_v12 }
 0x3f6   : > { %1264 = vmatmul.mubr.bf16.gmra.mrb[80].mxu1 %v3580_v17 }
 0x3f7   : > { %1271 = vmatprep.mubr.bf16.mxu1 %v3582_v19 }
 0x3fe   : > { %1272 = vmatmul.mubr.bf16.gmra.mrb[84].mxu1 %v3592_v23 }
 0x3ff   : > { %1279 = vmatprep.mubr.bf16.mxu1 %v3594_v24 }
 0x406   : > { %1280 = vmatmul.mubr.bf16.gmra.mrb[88].mxu1 %v3598_v25 }
 0x407   : > { %1287 = vmatprep.mubr.bf16.mxu1 %v3600_v26 }
 0x40e   : > { %1288 = vmatmul.mubr.bf16.gmra.mrb[92].mxu1 %v3604_v27 }
 0x469   : > { %v2338_v28 = vpop.f32.mrb[32].mxu1 }
 0x46a   : > { %v2339_v29 = vpop.f32.mrb[33].mxu1 }
 0x46b   : > { %v2340_v31 = vadd.f32 %v2339_v29, %v2338_v28  ;;  %v2341_v32 = vpop.f32.mrb[34].mxu1 }
 0x46c   : > { %v2342_v33 = vpop.f32.mrb[35].mxu1 }
 0x46d   : > { %v2343_v34 = vadd.f32 %v2342_v33, %v2341_v32  ;;  %v1170_v35 = vadd.f32 %v2340_v31, %v3610_v30 }
 0x46f   : > { %v1173_v36 = vadd.f32 %v2343_v34, %v3610_v30  ;;  %v1296_v38 = vmax.f32 %v1170_v35, 0.0 }
 0x471   : > { %v2344_v37 = vpop.f32.mrb[36].mxu1  ;;  %v1297_v39 = vmax.f32 %v1173_v36, 0.0 }
 0x472   : > { %v2345_v40 = vpop.f32.mrb[37].mxu1 }
 0x473   : > { %v2346_v41 = vadd.f32 %v2345_v40, %v2344_v37  ;;  %v2347_v42 = vpop.f32.mrb[38].mxu1  ;;  %v1328_v43 = vpack.c.bf16 %v1297_v39, %v1296_v38 }
 0x474   : > { %v2348_v45 = vpop.f32.mrb[39].mxu1 }
 0x475   : > { %v1178_v47 = vadd.f32 %v2346_v41, %v3610_v30  ;;  %v2349_v48 = vadd.f32 %v2348_v45, %v2347_v42  ;;  %2678 = vmatprep.mubr.bf16.mxu0 %v1328_v43 }
 0x477   : > { %v1181_v49 = vadd.f32 %v2349_v48, %v3610_v30  ;;  %v1298_v8 = vmax.f32 %v1178_v47, 0.0 }
 0x479   : > { %v1299_v9 = vmax.f32 %v1181_v49, 0.0  ;;  %v2350_v11 = vpop.f32.mrb[40].mxu1 }
 0x47a   : > { %v2351_v13 = vpop.f32.mrb[41].mxu1 }
 0x47b   : > { %v2352_v52 = vadd.f32 %v2351_v13, %v2350_v11  ;;  %v1329_v14 = vpack.c.bf16 %v1299_v9, %v1298_v8  ;;  %v2353_v15 = vpop.f32.mrb[42].mxu1 }
 0x47c   : > { %v2354_v16 = vpop.f32.mrb[43].mxu1 }
 0x47d   : > { %v1186_v18 = vadd.f32 %v2352_v52, %v3610_v30  ;;  %2679 = vmatmul.mubr.bf16.vlgmr.msra.gmra.mrb[0].mxu0 %v1329_v14  ;;  %v2355_v20 = vadd.f32 %v2354_v16, %v2353_v15 }
 0x47f   : > { %v1189_v21 = vadd.f32 %v2355_v20, %v3610_v30  ;;  %v1300_v22 = vmax.f32 %v1186_v18, 0.0 }
 0x481   : > { %v1301_v28 = vmax.f32 %v1189_v21, 0.0  ;;  %v2356_v29 = vpop.f32.mrb[44].mxu1 }
 0x482   : > { %v2357_v31 = vpop.f32.mrb[45].mxu1 }
 0x483   : > { %v2358_v32 = vadd.f32 %v2357_v31, %v2356_v29  ;;  %v2359_v33 = vpop.f32.mrb[46].mxu1  ;;  %v1330_v34 = vpack.c.bf16 %v1301_v28, %v1300_v22 }
 0x484   : > { %v2360_v35 = vpop.f32.mrb[47].mxu1 }
 0x485   : > { %v1194_v36 = vadd.f32 %v2358_v32, %v3610_v30  ;;  %v2361_v37 = vadd.f32 %v2360_v35, %v2359_v33  ;;  %2682 = vmatprep.mubr.bf16.mxu0 %v1330_v34 }
 0x487   : > { %v1197_v38 = vadd.f32 %v2361_v37, %v3610_v30  ;;  %v1302_v39 = vmax.f32 %v1194_v36, 0.0 }
 0x489   : > { %v1303_v40 = vmax.f32 %v1197_v38, 0.0  ;;  %v2362_v41 = vpop.f32.mrb[48].mxu1 }
 0x48a   : > { %v2363_v42 = vpop.f32.mrb[49].mxu1 }
 0x48b   : > { %v2364_v43 = vadd.f32 %v2363_v42, %v2362_v41  ;;  %v2365_v45 = vpop.f32.mrb[50].mxu1  ;;  %v1331_v47 = vpack.c.bf16 %v1303_v40, %v1302_v39 }
 0x48c   : > { %v2366_v48 = vpop.f32.mrb[51].mxu1 }
 0x48d   : > { %v1202_v49 = vadd.f32 %v2364_v43, %v3610_v30  ;;  %2683 = vmatmul.mubr.bf16.gmra.mrb[4].mxu0 %v1331_v47  ;;  %v2367_v8 = vadd.f32 %v2366_v48, %v2365_v45 }
 0x48f   : > { %v1205_v9 = vadd.f32 %v2367_v8, %v3610_v30  ;;  %v1304_v11 = vmax.f32 %v1202_v49, 0.0 }
 0x491   : > { %v1305_v13 = vmax.f32 %v1205_v9, 0.0  ;;  %v2368_v52 = vpop.f32.mrb[52].mxu1 }
 0x492   : > { %v2369_v14 = vpop.f32.mrb[53].mxu1 }
 0x493   : > { %v2370_v15 = vadd.f32 %v2369_v14, %v2368_v52  ;;  %v2371_v16 = vpop.f32.mrb[54].mxu1  ;;  %v1332_v18 = vpack.c.bf16 %v1305_v13, %v1304_v11 }
 0x494   : > { %v2372_v20 = vpop.f32.mrb[55].mxu1 }
 0x495   : > { %v1210_v21 = vadd.f32 %v2370_v15, %v3610_v30  ;;  %v2373_v22 = vadd.f32 %v2372_v20, %v2371_v16  ;;  %2686 = vmatprep.mubr.bf16.mxu0 %v1332_v18 }
 0x497   : > { %v1213_v28 = vadd.f32 %v2373_v22, %v3610_v30  ;;  %v1306_v29 = vmax.f32 %v1210_v21, 0.0 }
 0x499   : > { %v1307_v31 = vmax.f32 %v1213_v28, 0.0  ;;  %v2374_v32 = vpop.f32.mrb[56].mxu1 }
 0x49a   : > { %v2375_v33 = vpop.f32.mrb[57].mxu1 }
 0x49b   : > { %v2376_v34 = vadd.f32 %v2375_v33, %v2374_v32  ;;  %v2377_v35 = vpop.f32.mrb[58].mxu1  ;;  %v1333_v36 = vpack.c.bf16 %v1307_v31, %v1306_v29 }
 0x49c   : > { %v2378_v37 = vpop.f32.mrb[59].mxu1 }
 0x49d   : > { %v1218_v38 = vadd.f32 %v2376_v34, %v3610_v30  ;;  %v2379_v39 = vadd.f32 %v2378_v37, %v2377_v35  ;;  %2687 = vmatmul.mubr.bf16.gmra.mrb[8].mxu0 %v1333_v36 }
 0x49f   : > { %v1221_v40 = vadd.f32 %v2379_v39, %v3610_v30  ;;  %v1308_v41 = vmax.f32 %v1218_v38, 0.0 }
 0x4a1   : > { %v1309_v42 = vmax.f32 %v1221_v40, 0.0  ;;  %v2380_v43 = vpop.f32.mrb[60].mxu1 }
 0x4a2   : > { %v2381_v45 = vpop.f32.mrb[61].mxu1 }
 0x4a3   : > { %v2382_v47 = vadd.f32 %v2381_v45, %v2380_v43  ;;  %v2383_v48 = vpop.f32.mrb[62].mxu1  ;;  %v1334_v49 = vpack.c.bf16 %v1309_v42, %v1308_v41 }
 0x4a4   : > { %v2384_v8 = vpop.f32.mrb[63].mxu1 }
 0x4a5   : > { %v1226_v9 = vadd.f32 %v2382_v47, %v3610_v30  ;;  %v2385_v11 = vadd.f32 %v2384_v8, %v2383_v48  ;;  %2690 = vmatprep.mubr.bf16.mxu0 %v1334_v49 }
 0x4a7   : > { %v1229_v13 = vadd.f32 %v2385_v11, %v3610_v30  ;;  %v1310_v52 = vmax.f32 %v1226_v9, 0.0 }
 0x4a9   : > { %v1311_v14 = vmax.f32 %v1229_v13, 0.0  ;;  %v2386_v15 = vpop.f32.mrb[64].mxu1 }
 0x4aa   : > { %v2387_v16 = vpop.f32.mrb[65].mxu1 }
 0x4ab   : > { %v2388_v18 = vadd.f32 %v2387_v16, %v2386_v15  ;;  %v2389_v20 = vpop.f32.mrb[66].mxu1  ;;  %v1335_v21 = vpack.c.bf16 %v1311_v14, %v1310_v52 }
 0x4ac   : > { %v2390_v22 = vpop.f32.mrb[67].mxu1 }
 0x4ad   : > { %v1234_v28 = vadd.f32 %v2388_v18, %v3610_v30  ;;  %v2391_v29 = vadd.f32 %v2390_v22, %v2389_v20  ;;  %2691 = vmatmul.mubr.bf16.gmra.mrb[12].mxu0 %v1335_v21 }
 0x4af   : > { %v1237_v31 = vadd.f32 %v2391_v29, %v3610_v30  ;;  %v1312_v32 = vmax.f32 %v1234_v28, 0.0 }
 0x4b1   : > { %v1313_v33 = vmax.f32 %v1237_v31, 0.0  ;;  %v2392_v34 = vpop.f32.mrb[68].mxu1 }
 0x4b2   : > { %v2393_v35 = vpop.f32.mrb[69].mxu1 }
 0x4b3   : > { %v2394_v36 = vadd.f32 %v2393_v35, %v2392_v34  ;;  %v2395_v37 = vpop.f32.mrb[70].mxu1  ;;  %v1336_v38 = vpack.c.bf16 %v1313_v33, %v1312_v32 }
 0x4b4   : > { %v2396_v39 = vpop.f32.mrb[71].mxu1 }
 0x4b5   : > { %v1242_v40 = vadd.f32 %v2394_v36, %v3610_v30  ;;  %v2397_v41 = vadd.f32 %v2396_v39, %v2395_v37  ;;  %2694 = vmatprep.mubr.bf16.mxu0 %v1336_v38 }
 0x4b7   : > { %v1245_v42 = vadd.f32 %v2397_v41, %v3610_v30  ;;  %v1314_v43 = vmax.f32 %v1242_v40, 0.0 }
 0x4b9   : > { %v1315_v45 = vmax.f32 %v1245_v42, 0.0  ;;  %v2398_v47 = vpop.f32.mrb[72].mxu1 }
 0x4ba   : > { %v2399_v48 = vpop.f32.mrb[73].mxu1 }
 0x4bb   : > { %v1337_v49 = vpack.c.bf16 %v1315_v45, %v1314_v43  ;;  %v2400_v8 = vadd.f32 %v2399_v48, %v2398_v47  ;;  %v2401_v9 = vpop.f32.mrb[74].mxu1 }
 0x4bc   : > { %v2402_v11 = vpop.f32.mrb[75].mxu1 }
 0x4bd   : > { %2695 = vmatmul.mubr.bf16.gmra.mrb[16].mxu0 %v1337_v49  ;;  %v1250_v13 = vadd.f32 %v2400_v8, %v3610_v30  ;;  %v2403_v52 = vadd.f32 %v2402_v11, %v2401_v9 }
 0x4bf   : > { %v1253_v14 = vadd.f32 %v2403_v52, %v3610_v30  ;;  %v1316_v15 = vmax.f32 %v1250_v13, 0.0 }
 0x4c1   : > { %v1317_v16 = vmax.f32 %v1253_v14, 0.0  ;;  %v2404_v18 = vpop.f32.mrb[76].mxu1 }
 0x4c2   : > { %v2405_v20 = vpop.f32.mrb[77].mxu1 }
 0x4c3   : > { %v2406_v21 = vadd.f32 %v2405_v20, %v2404_v18  ;;  %v2407_v22 = vpop.f32.mrb[78].mxu1  ;;  %v1338_v28 = vpack.c.bf16 %v1317_v16, %v1316_v15 }
 0x4c4   : > { %v2408_v29 = vpop.f32.mrb[79].mxu1 }
 0x4c5   : > { %v1258_v31 = vadd.f32 %v2406_v21, %v3610_v30  ;;  %v2409_v32 = vadd.f32 %v2408_v29, %v2407_v22  ;;  %2698 = vmatprep.mubr.bf16.mxu0 %v1338_v28 }
 0x4c7   : > { %v1261_v33 = vadd.f32 %v2409_v32, %v3610_v30  ;;  %v1318_v34 = vmax.f32 %v1258_v31, 0.0 }
 0x4c9   : > { %v1319_v35 = vmax.f32 %v1261_v33, 0.0  ;;  %v2410_v36 = vpop.f32.mrb[80].mxu1 }
 0x4ca   : > { %v2411_v37 = vpop.f32.mrb[81].mxu1 }
 0x4cb   : > { %v1339_v38 = vpack.c.bf16 %v1319_v35, %v1318_v34  ;;  %v2412_v39 = vadd.f32 %v2411_v37, %v2410_v36  ;;  %v2413_v40 = vpop.f32.mrb[82].mxu1 }
 0x4cc   : > { %v2414_v41 = vpop.f32.mrb[83].mxu1 }
 0x4cd   : > { %2699 = vmatmul.mubr.bf16.gmra.mrb[20].mxu0 %v1339_v38  ;;  %v1266_v42 = vadd.f32 %v2412_v39, %v3610_v30  ;;  %v2415_v43 = vadd.f32 %v2414_v41, %v2413_v40 }
 0x4cf   : > { %v1269_v45 = vadd.f32 %v2415_v43, %v3610_v30  ;;  %v1320_v47 = vmax.f32 %v1266_v42, 0.0 }
 0x4d1   : > { %v1321_v48 = vmax.f32 %v1269_v45, 0.0  ;;  %v2416_v49 = vpop.f32.mrb[84].mxu1 }
 0x4d2   : > { %v2417_v8 = vpop.f32.mrb[85].mxu1 }
 0x4d3   : > { %v2418_v9 = vadd.f32 %v2417_v8, %v2416_v49  ;;  %v2419_v11 = vpop.f32.mrb[86].mxu1  ;;  %v1340_v13 = vpack.c.bf16 %v1321_v48, %v1320_v47 }
 0x4d4   : > { %v2420_v52 = vpop.f32.mrb[87].mxu1 }
 0x4d5   : > { %v1274_v14 = vadd.f32 %v2418_v9, %v3610_v30  ;;  %v2421_v15 = vadd.f32 %v2420_v52, %v2419_v11  ;;  %2702 = vmatprep.mubr.bf16.mxu0 %v1340_v13 }
 0x4d7   : > { %v1277_v16 = vadd.f32 %v2421_v15, %v3610_v30  ;;  %v1322_v18 = vmax.f32 %v1274_v14, 0.0 }
 0x4d9   : > { %v1323_v20 = vmax.f32 %v1277_v16, 0.0  ;;  %v2422_v21 = vpop.f32.mrb[88].mxu1 }
 0x4da   : > { %v2423_v22 = vpop.f32.mrb[89].mxu1 }
 0x4db   : > { %v1341_v28 = vpack.c.bf16 %v1323_v20, %v1322_v18  ;;  %v2424_v29 = vadd.f32 %v2423_v22, %v2422_v21  ;;  %v2425_v31 = vpop.f32.mrb[90].mxu1 }
 0x4dc   : > { %v2426_v32 = vpop.f32.mrb[91].mxu1 }
 0x4dd   : > { %2703 = vmatmul.mubr.bf16.gmra.mrb[24].mxu0 %v1341_v28  ;;  %v1282_v33 = vadd.f32 %v2424_v29, %v3610_v30  ;;  %v2427_v34 = vadd.f32 %v2426_v32, %v2425_v31 }
 0x4df   : > { %v1285_v35 = vadd.f32 %v2427_v34, %v3610_v30  ;;  %v1324_v36 = vmax.f32 %v1282_v33, 0.0 }
 0x4e1   : > { %v1325_v37 = vmax.f32 %v1285_v35, 0.0  ;;  %v2428_v38 = vpop.f32.mrb[92].mxu1 }
 0x4e2   : > { %v2429_v39 = vpop.f32.mrb[93].mxu1 }
 0x4e3   : > { %v2430_v40 = vadd.f32 %v2429_v39, %v2428_v38  ;;  %v2431_v41 = vpop.f32.mrb[94].mxu1  ;;  %v1342_v42 = vpack.c.bf16 %v1325_v37, %v1324_v36 }
 0x4e4   : > { %v2432_v43 = vpop.f32.mrb[95].mxu1 }
 0x4e5   : > { %v1290_v45 = vadd.f32 %v2430_v40, %v3610_v30  ;;  %v2433_v47 = vadd.f32 %v2432_v43, %v2431_v41  ;;  %2706 = vmatprep.mubr.bf16.mxu0 %v1342_v42 }
 0x4e7   : > { %v1293_v48 = vadd.f32 %v2433_v47, %v3610_v30  ;;  %v1326_v49 = vmax.f32 %v1290_v45, 0.0 }
 0x4e9   : > { %v1327_v8 = vmax.f32 %v1293_v48, 0.0 }
 0x4eb   : > { %v1343_v9 = vpack.c.bf16 %v1327_v8, %v1326_v49 }
 0x4ed   : > { %2707 = vmatmul.mubr.bf16.gmra.mrb[28].mxu0 %v1343_v9 }
 0x4ee   : > { %1560 = vmatprep.mubr.bf16.mxu0 %v3463_v51 }
 0x550   : > { %v2680_v11 = vpop.f32.mrb[0].mxu0 }
 0x551   : > { %v1378_v13 = vpop.f32.mrb[1].mxu0 }
 0x552   : > { %v2681_v52 = vpop.f32.mrb[2].mxu0 }
 0x553   : > { %v1506_v14 = vpack.c.bf16 %v2681_v52, %v2680_v11  ;;  %v1381_v15 = vpop.f32.mrb[3].mxu0 }
 0x554   : > { %v1505_v16 = vpack.c.bf16 %v1381_v15, %v1378_v13 }
 0x560   : > { %v2684_v18 = vpop.f32.mrb[4].mxu0 }
 0x561   : > { %v1394_v20 = vpop.f32.mrb[5].mxu0 }
 0x562   : > { %v2685_v21 = vpop.f32.mrb[6].mxu0 }
 0x563   : > { %v1508_v22 = vpack.c.bf16 %v2685_v21, %v2684_v18  ;;  %v1397_v28 = vpop.f32.mrb[7].mxu0 }
 0x564   : > { %v1507_v29 = vpack.c.bf16 %v1397_v28, %v1394_v20 }
 0x570   : > { %v2688_v31 = vpop.f32.mrb[8].mxu0 }
 0x571   : > { %v1410_v30 = vpop.f32.mrb[9].mxu0 }
 0x572   : > { %v2689_v32 = vpop.f32.mrb[10].mxu0 }
 0x573   : > { %v1510_v33 = vpack.c.bf16 %v2689_v32, %v2688_v31  ;;  %v1413_v34 = vpop.f32.mrb[11].mxu0 }
 0x574   : > { %v1509_v35 = vpack.c.bf16 %v1413_v34, %v1410_v30 }
 0x580   : > { %v2692_v36 = vpop.f32.mrb[12].mxu0 }
 0x581   : > { %v1426_v51 = vpop.f32.mrb[13].mxu0 }
 0x582   : > { %v2693_v37 = vpop.f32.mrb[14].mxu0 }
 0x583   : > { %v1512_v38 = vpack.c.bf16 %v2693_v37, %v2692_v36  ;;  %v1429_v39 = vpop.f32.mrb[15].mxu0 }
 0x584   : > { %v1511_v40 = vpack.c.bf16 %v1429_v39, %v1426_v51 }
 0x590   : > { %v2696_v41 = vpop.f32.mrb[16].mxu0 }
 0x591   : > { %v1442_v42 = vpop.f32.mrb[17].mxu0 }
 0x592   : > { %v2697_v43 = vpop.f32.mrb[18].mxu0 }
 0x593   : > { %v1514_v45 = vpack.c.bf16 %v2697_v43, %v2696_v41  ;;  %v1445_v47 = vpop.f32.mrb[19].mxu0 }
 0x594   : > { %v1513_v48 = vpack.c.bf16 %v1445_v47, %v1442_v42 }
 0x596   : > { %2458 = vmatprep.subr.bf16.mxu0 %v1513_v48 }
 0x597   : > { %2459 = vmatpush3.bf16.msra.mxu0 %v1505_v16 }
 0x598   : > { %2460 = vmatprep.subr.bf16.mxu0 %v1514_v45 }
 0x59b   : > { %2461 = vmatpush3.bf16.msra.mxu0 %v1506_v14 }
 0x5a0   : > { %v2700_v49 = vpop.f32.mrb[20].mxu0 }
 0x5a1   : > { %v1458_v8 = vpop.f32.mrb[21].mxu0 }
 0x5a2   : > { %v2701_v9 = vpop.f32.mrb[22].mxu0 }
 0x5a3   : > { %v1516_v11 = vpack.c.bf16 %v2701_v9, %v2700_v49  ;;  %v1461_v13 = vpop.f32.mrb[23].mxu0 }
 0x5a4   : > { %v1515_v52 = vpack.c.bf16 %v1461_v13, %v1458_v8 }
 0x5a6   : > { %2462 = vmatprep.subr.bf16.mxu0 %v1515_v52 }
 0x5a7   : > { %2463 = vmatpush3.bf16.msra.mxu0 %v1507_v29 }
 0x5a8   : > { %2464 = vmatprep.subr.bf16.mxu0 %v1516_v11 }
 0x5ab   : > { %2465 = vmatpush3.bf16.msra.mxu0 %v1508_v22 }
 0x5b0   : > { %v2704_v15 = vpop.f32.mrb[24].mxu0 }
 0x5b1   : > { %v1474_v18 = vpop.f32.mrb[25].mxu0 }
 0x5b2   : > { %v2705_v20 = vpop.f32.mrb[26].mxu0 }
 0x5b3   : > { %v1518_v21 = vpack.c.bf16 %v2705_v20, %v2704_v15  ;;  %v1477_v28 = vpop.f32.mrb[27].mxu0 }
 0x5b4   : > { %v1517_v31 = vpack.c.bf16 %v1477_v28, %v1474_v18 }
 0x5b6   : > { %2466 = vmatprep.subr.bf16.mxu0 %v1517_v31 }
 0x5b7   : > { %2467 = vmatpush3.bf16.msra.mxu0 %v1509_v35 }
 0x5b8   : > { %2468 = vmatprep.subr.bf16.mxu0 %v1518_v21 }
 0x5bb   : > { %2469 = vmatpush3.bf16.msra.mxu0 %v1510_v33 }
 0x5c0   : > { %v2708_v14 = vpop.f32.mrb[28].mxu0 }
 0x5c1   : > { %v1490_v16 = vpop.f32.mrb[29].mxu0 }
 0x5c2   : > { %v2709_v30 = vpop.f32.mrb[30].mxu0 }
 0x5c3   : > { %v1520_v32 = vpack.c.bf16 %v2709_v30, %v2708_v14  ;;  %v1493_v34 = vpop.f32.mrb[31].mxu0 }
 0x5c4   : > { %v1519_v36 = vpack.c.bf16 %v1493_v34, %v1490_v16 }
 0x5c6   : > { %2470 = vmatprep.subr.bf16.mxu0 %v1519_v36 }
 0x5c7   : > { %2471 = vmatpush3.bf16.msra.mxu0 %v1511_v40 }
 0x5c8   : > { %2472 = vmatprep.subr.bf16.mxu0 %v1520_v32 }
 0x5cb   : > { %2473 = vmatpush3.bf16.msra.mxu0 %v1512_v38 }
 0x5ce   : > { %1561 = vmatmul.mubr.bf16.vlgmr.msra.gmra.mrb[32].mxu0 %v3484_v44  ;;  %v1689_v44 = vlaneseq }
 0x5cf   : > { %1568 = vmatprep.mubr.bf16.mxu0 %v3486_v46 }
 0x5d0   : > { %v3676_v46 = vand.u32 127, %v1689_v44 }
 0x5d2   : > { %vm1691_vm1 = vcmp.lt.s32.totalorder %v3676_v46, 7 }
 0x5d6   : > { %1569 = vmatmul.mubr.bf16.gmra.mrb[36].mxu0 %v3496_v50 }
 0x5d7   : > { %1576 = vmatprep.mubr.bf16.mxu0 %v3498_v53  ;;  %v3681_v53 = vld [vmem:[%s4111_s7] ss:$0 sm:$0xff] }
 0x5de   : > { %1577 = vmatmul.mubr.bf16.gmra.mrb[40].mxu0 %v3502_v54 }
 0x5df   : > { %1584 = vmatprep.mubr.bf16.mxu0 %v3504_v55 }
 0x5e6   : > { %1585 = vmatmul.mubr.bf16.gmra.mrb[44].mxu0 %v3508_v56 }
 0x5e7   : > { %1592 = vmatprep.mubr.bf16.mxu0 %v3510_v57 }
 0x5ee   : > { %1593 = vmatmul.mubr.bf16.gmra.mrb[48].mxu0 %v3514_v58 }
 0x5ef   : > { %1600 = vmatprep.mubr.bf16.mxu0 %v3516_v59 }
 0x5f6   : > { %1601 = vmatmul.mubr.bf16.gmra.mrb[52].mxu0 %v3520_v60 }
 0x5f7   : > { %1608 = vmatprep.mubr.bf16.mxu0 %v3522_v61 }
 0x5fe   : > { %1609 = vmatmul.mubr.bf16.gmra.mrb[56].mxu0 %v3526_v62 }
 0x5ff   : > { %1616 = vmatprep.mubr.bf16.mxu0 %v3528_v63 }
 0x606   : > { %1617 = vmatmul.mubr.bf16.gmra.mrb[60].mxu0 %v3532_v0 }
 0x607   : > { %1624 = vmatprep.mubr.bf16.mxu0 %v3534_v1 }
 0x60e   : > { %1625 = vmatmul.mubr.bf16.gmra.mrb[64].mxu0 %v3538_v2 }
 0x60f   : > { %1632 = vmatprep.mubr.bf16.mxu0 %v3540_v3 }
 0x616   : > { %1633 = vmatmul.mubr.bf16.gmra.mrb[68].mxu0 %v3544_v4 }
 0x617   : > { %1640 = vmatprep.mubr.bf16.mxu0 %v3546_v5 }
 0x61e   : > { %1641 = vmatmul.mubr.bf16.gmra.mrb[72].mxu0 %v3550_v6 }
 0x61f   : > { %1648 = vmatprep.mubr.bf16.mxu0 %v3552_v7 }
 0x626   : > { %1649 = vmatmul.mubr.bf16.gmra.mrb[76].mxu0 %v3562_v10 }
 0x627   : > { %1656 = vmatprep.mubr.bf16.mxu0 %v3564_v12 }
 0x62e   : > { %1657 = vmatmul.mubr.bf16.gmra.mrb[80].mxu0 %v3580_v17 }
 0x62f   : > { %1664 = vmatprep.mubr.bf16.mxu0 %v3582_v19 }
 0x636   : > { %1665 = vmatmul.mubr.bf16.gmra.mrb[84].mxu0 %v3592_v23 }
 0x637   : > { %1672 = vmatprep.mubr.bf16.mxu0 %v3594_v24 }
 0x63e   : > { %1673 = vmatmul.mubr.bf16.gmra.mrb[88].mxu0 %v3598_v25 }
 0x63f   : > { %1680 = vmatprep.mubr.bf16.mxu0 %v3600_v26 }
 0x646   : > { %1681 = vmatmul.mubr.bf16.gmra.mrb[92].mxu0 %v3604_v27 }
 0x6a1   : > { %v2474_v50 = vpop.f32.mrb[32].mxu0 }
 0x6a2   : > { %v2475_v54 = vpop.f32.mrb[33].mxu0 }
 0x6a3   : > { %v2476_v55 = vadd.f32 %v2475_v54, %v2474_v50  ;;  %v2477_v56 = vpop.f32.mrb[34].mxu0 }
 0x6a4   : > { %v2478_v57 = vpop.f32.mrb[35].mxu0 }
 0x6a5   : > { %v1563_v58 = vadd.f32 %v2476_v55, %v3681_v53  ;;  %v2479_v59 = vadd.f32 %v2478_v57, %v2477_v56 }
 0x6a7   : > { %v1566_v60 = vadd.f32 %v2479_v59, %v3681_v53  ;;  %v3688_v61 = vsel %vm1691_vm1, %v1563_v58, -inf }
 0x6a8   : > { %1724 = vmax.xlane.f32.xlu0 %v3688_v61 }
 0x6a9   : > { %v2480_v62 = vpop.f32.mrb[36].mxu0  ;;  %v3693_v1 = vsel %vm1691_vm1, %v1566_v60, -inf }
 0x6aa   : > { %v2481_v63 = vpop.f32.mrb[37].mxu0 }
 0x6ab   : > { %v2482_v0 = vadd.f32 %v2481_v63, %v2480_v62  ;;  %v2483_v2 = vpop.f32.mrb[38].mxu0 }
 0x6ac   : > { %1726 = vmax.xlane.f32.xlu0 %v3693_v1  ;;  %v2484_v3 = vpop.f32.mrb[39].mxu0 }
 0x6ad   : > { %v1571_v4 = vadd.f32 %v2482_v0, %v3681_v53  ;;  %v2485_v5 = vadd.f32 %v2484_v3, %v2483_v2 }
 0x6af   : > { %v1574_v6 = vadd.f32 %v2485_v5, %v3681_v53  ;;  %v3700_v7 = vsel %vm1691_vm1, %v1571_v4, -inf }
 0x6b0   : > { %1728 = vmax.xlane.f32.xlu1 %v3700_v7 }
 0x6b1   : > { %v2486_v10 = vpop.f32.mrb[40].mxu0  ;;  %v3705_v23 = vsel %vm1691_vm1, %v1574_v6, -inf }
 0x6b2   : > { %v2487_v12 = vpop.f32.mrb[41].mxu0 }
 0x6b3   : > { %v2488_v17 = vadd.f32 %v2487_v12, %v2486_v10  ;;  %v2489_v19 = vpop.f32.mrb[42].mxu0 }
 0x6b4   : > { %v2490_v24 = vpop.f32.mrb[43].mxu0  ;;  %1730 = vmax.xlane.f32.xlu1 %v3705_v23 }
 0x6b5   : > { %v1579_v25 = vadd.f32 %v2488_v17, %v3681_v53  ;;  %v2491_v26 = vadd.f32 %v2490_v24, %v2489_v19 }
 0x6b7   : > { %v1582_v27 = vadd.f32 %v2491_v26, %v3681_v53  ;;  %v3712_v22 = vsel %vm1691_vm1, %v1579_v25, -inf }
 0x6b8   : > { %1732 = vmax.xlane.f32.xlu0 %v3712_v22 }
 0x6b9   : > { %v2492_v29 = vpop.f32.mrb[44].mxu0  ;;  %v3717_v33 = vsel %vm1691_vm1, %v1582_v27, -inf }
 0x6ba   : > { %v2493_v35 = vpop.f32.mrb[45].mxu0  ;;  %1734 = vmax.xlane.f32.xlu1 %v3717_v33 }
 0x6bb   : > { %v2494_v51 = vadd.f32 %v2493_v35, %v2492_v29  ;;  %v2495_v37 = vpop.f32.mrb[46].mxu0 }
 0x6bc   : > { %v2496_v38 = vpop.f32.mrb[47].mxu0 }
 0x6bd   : > { %v1587_v39 = vadd.f32 %v2494_v51, %v3681_v53  ;;  %v2497_v40 = vadd.f32 %v2496_v38, %v2495_v37 }
 0x6bf   : > { %v1590_v41 = vadd.f32 %v2497_v40, %v3681_v53  ;;  %v3724_v42 = vsel %vm1691_vm1, %v1587_v39, -inf }
 0x6c0   : > { %1736 = vmax.xlane.f32.xlu0 %v3724_v42 }
 0x6c1   : > { %v2498_v43 = vpop.f32.mrb[48].mxu0  ;;  %v3729_v45 = vsel %vm1691_vm1, %v1590_v41, -inf }
 0x6c2   : > { %v2499_v47 = vpop.f32.mrb[49].mxu0  ;;  %1738 = vmax.xlane.f32.xlu1 %v3729_v45 }
 0x6c3   : > { %v2500_v48 = vadd.f32 %v2499_v47, %v2498_v43  ;;  %v2501_v49 = vpop.f32.mrb[50].mxu0 }
 0x6c4   : > { %v2502_v8 = vpop.f32.mrb[51].mxu0 }
 0x6c5   : > { %v1595_v9 = vadd.f32 %v2500_v48, %v3681_v53  ;;  %v2503_v11 = vadd.f32 %v2502_v8, %v2501_v49 }
 0x6c7   : > { %v1598_v13 = vadd.f32 %v2503_v11, %v3681_v53  ;;  %v3736_v52 = vsel %vm1691_vm1, %v1595_v9, -inf }
 0x6c8   : > { %1740 = vmax.xlane.f32.xlu0 %v3736_v52 }
 0x6c9   : > { %v2504_v15 = vpop.f32.mrb[52].mxu0  ;;  %v3741_v18 = vsel %vm1691_vm1, %v1598_v13, -inf }
 0x6ca   : > { %v2505_v20 = vpop.f32.mrb[53].mxu0  ;;  %1742 = vmax.xlane.f32.xlu1 %v3741_v18 }
 0x6cb   : > { %v2506_v21 = vadd.f32 %v2505_v20, %v2504_v15  ;;  %v2507_v28 = vpop.f32.mrb[54].mxu0 }
 0x6cc   : > { %v2508_v31 = vpop.f32.mrb[55].mxu0 }
 0x6cd   : > { %v1603_v14 = vadd.f32 %v2506_v21, %v3681_v53  ;;  %v2509_v16 = vadd.f32 %v2508_v31, %v2507_v28 }
 0x6cf   : > { %v1606_v30 = vadd.f32 %v2509_v16, %v3681_v53  ;;  %v3748_v32 = vsel %vm1691_vm1, %v1603_v14, -inf }
 0x6d0   : > { %1744 = vmax.xlane.f32.xlu0 %v3748_v32 }
 0x6d1   : > { %v2510_v34 = vpop.f32.mrb[56].mxu0  ;;  %v3753_v36 = vsel %vm1691_vm1, %v1606_v30, -inf }
 0x6d2   : > { %v2511_v44 = vpop.f32.mrb[57].mxu0  ;;  %1746 = vmax.xlane.f32.xlu1 %v3753_v36 }
 0x6d3   : > { %v2512_v50 = vadd.f32 %v2511_v44, %v2510_v34  ;;  %v2513_v54 = vpop.f32.mrb[58].mxu0 }
 0x6d4   : > { %v2514_v55 = vpop.f32.mrb[59].mxu0 }
 0x6d5   : > { %v1611_v56 = vadd.f32 %v2512_v50, %v3681_v53  ;;  %v2515_v57 = vadd.f32 %v2514_v55, %v2513_v54 }
 0x6d7   : > { %v1614_v58 = vadd.f32 %v2515_v57, %v3681_v53  ;;  %v3760_v59 = vsel %vm1691_vm1, %v1611_v56, -inf }
 0x6d8   : > { %1748 = vmax.xlane.f32.xlu0 %v3760_v59 }
 0x6d9   : > { %v2516_v60 = vpop.f32.mrb[60].mxu0  ;;  %v3765_v62 = vsel %vm1691_vm1, %v1614_v58, -inf }
 0x6da   : > { %v2517_v63 = vpop.f32.mrb[61].mxu0  ;;  %1750 = vmax.xlane.f32.xlu1 %v3765_v62 }
 0x6db   : > { %v2518_v0 = vadd.f32 %v2517_v63, %v2516_v60  ;;  %v2519_v2 = vpop.f32.mrb[62].mxu0 }
 0x6dc   : > { %v2520_v3 = vpop.f32.mrb[63].mxu0 }
 0x6dd   : > { %v1619_v4 = vadd.f32 %v2518_v0, %v3681_v53  ;;  %v2521_v5 = vadd.f32 %v2520_v3, %v2519_v2 }
 0x6df   : > { %v1622_v6 = vadd.f32 %v2521_v5, %v3681_v53  ;;  %v3772_v10 = vsel %vm1691_vm1, %v1619_v4, -inf }
 0x6e0   : > { %1752 = vmax.xlane.f32.xlu0 %v3772_v10 }
 0x6e1   : > { %v2522_v12 = vpop.f32.mrb[64].mxu0  ;;  %v3777_v17 = vsel %vm1691_vm1, %v1622_v6, -inf }
 0x6e2   : > { %v2523_v19 = vpop.f32.mrb[65].mxu0  ;;  %1754 = vmax.xlane.f32.xlu1 %v3777_v17 }
 0x6e3   : > { %v2524_v24 = vadd.f32 %v2523_v19, %v2522_v12  ;;  %v2525_v25 = vpop.f32.mrb[66].mxu0 }
 0x6e4   : > { %v2526_v26 = vpop.f32.mrb[67].mxu0 }
 0x6e5   : > { %v1627_v27 = vadd.f32 %v2524_v24, %v3681_v53  ;;  %v2527_v29 = vadd.f32 %v2526_v26, %v2525_v25 }
 0x6e7   : > { %v1630_v35 = vadd.f32 %v2527_v29, %v3681_v53  ;;  %v3784_v51 = vsel %vm1691_vm1, %v1627_v27, -inf }
 0x6e8   : > { %1756 = vmax.xlane.f32.xlu0 %v3784_v51 }
 0x6e9   : > { %v2528_v37 = vpop.f32.mrb[68].mxu0  ;;  %v3789_v38 = vsel %vm1691_vm1, %v1630_v35, -inf }
 0x6ea   : > { %v2529_v39 = vpop.f32.mrb[69].mxu0  ;;  %1758 = vmax.xlane.f32.xlu1 %v3789_v38 }
 0x6eb   : > { %v2530_v40 = vadd.f32 %v2529_v39, %v2528_v37  ;;  %v2531_v41 = vpop.f32.mrb[70].mxu0 }
 0x6ec   : > { %v2532_v43 = vpop.f32.mrb[71].mxu0 }
 0x6ed   : > { %v1635_v47 = vadd.f32 %v2530_v40, %v3681_v53  ;;  %v2533_v48 = vadd.f32 %v2532_v43, %v2531_v41 }
 0x6ef   : > { %v1638_v49 = vadd.f32 %v2533_v48, %v3681_v53  ;;  %v3796_v8 = vsel %vm1691_vm1, %v1635_v47, -inf }
 0x6f0   : > { %1760 = vmax.xlane.f32.xlu0 %v3796_v8 }
 0x6f1   : > { %v2534_v9 = vpop.f32.mrb[72].mxu0  ;;  %v3801_v11 = vsel %vm1691_vm1, %v1638_v49, -inf }
 0x6f2   : > { %v2535_v13 = vpop.f32.mrb[73].mxu0  ;;  %1762 = vmax.xlane.f32.xlu1 %v3801_v11 }
 0x6f3   : > { %v2536_v15 = vadd.f32 %v2535_v13, %v2534_v9  ;;  %v2537_v20 = vpop.f32.mrb[74].mxu0 }
 0x6f4   : > { %v2538_v21 = vpop.f32.mrb[75].mxu0 }
 0x6f5   : > { %v1643_v28 = vadd.f32 %v2536_v15, %v3681_v53  ;;  %v2539_v31 = vadd.f32 %v2538_v21, %v2537_v20 }
 0x6f7   : > { %v1646_v14 = vadd.f32 %v2539_v31, %v3681_v53  ;;  %v3808_v16 = vsel %vm1691_vm1, %v1643_v28, -inf }
 0x6f8   : > { %4129 = vst [vmem:[#allocation11_spill] sm:$0xff] %v3808_v16  ;;  %1764 = vmax.xlane.f32.xlu0 %v3808_v16 }
 0x6f9   : > { %v2540_v30 = vpop.f32.mrb[76].mxu0  ;;  %v3813_v34 = vsel %vm1691_vm1, %v1646_v14, -inf }
 0x6fa   : > { %4130 = vst [vmem:[#allocation12_spill] sm:$0xff] %v3813_v34  ;;  %v2541_v44 = vpop.f32.mrb[77].mxu0  ;;  %1766 = vmax.xlane.f32.xlu1 %v3813_v34 }
 0x6fb   : > { %v2542_v50 = vadd.f32 %v2541_v44, %v2540_v30  ;;  %v2543_v54 = vpop.f32.mrb[78].mxu0 }
 0x6fc   : > { %v2544_v55 = vpop.f32.mrb[79].mxu0 }
 0x6fd   : > { %v1651_v56 = vadd.f32 %v2542_v50, %v3681_v53  ;;  %v2545_v57 = vadd.f32 %v2544_v55, %v2543_v54 }
 0x6ff   : > { %v1654_v58 = vadd.f32 %v2545_v57, %v3681_v53  ;;  %v3820_v60 = vsel %vm1691_vm1, %v1651_v56, -inf }
 0x700   : > { %4131 = vst [vmem:[#allocation13_spill] sm:$0xff] %v3820_v60  ;;  %1768 = vmax.xlane.f32.xlu0 %v3820_v60 }
 0x701   : > { %v2546_v63 = vpop.f32.mrb[80].mxu0  ;;  %v3825_v0 = vsel %vm1691_vm1, %v1654_v58, -inf }
 0x702   : > { %4132 = vst [vmem:[#allocation14_spill] sm:$0xff] %v3825_v0  ;;  %v2547_v2 = vpop.f32.mrb[81].mxu0  ;;  %1770 = vmax.xlane.f32.xlu1 %v3825_v0 }
 0x703   : > { %v2548_v3 = vadd.f32 %v2547_v2, %v2546_v63  ;;  %v2549_v4 = vpop.f32.mrb[82].mxu0 }
 0x704   : > { %v2550_v5 = vpop.f32.mrb[83].mxu0 }
 0x705   : > { %v1659_v6 = vadd.f32 %v2548_v3, %v3681_v53  ;;  %v2551_v12 = vadd.f32 %v2550_v5, %v2549_v4 }
 0x707   : > { %v1662_v19 = vadd.f32 %v2551_v12, %v3681_v53  ;;  %v3832_v24 = vsel %vm1691_vm1, %v1659_v6, -inf }
 0x708   : > { %4133 = vst [vmem:[#allocation15_spill] sm:$0xff] %v3832_v24  ;;  %1772 = vmax.xlane.f32.xlu0 %v3832_v24 }
 0x709   : > { %v2552_v25 = vpop.f32.mrb[84].mxu0  ;;  %v3837_v26 = vsel %vm1691_vm1, %v1662_v19, -inf }
 0x70a   : > { %4134 = vst [vmem:[#allocation16_spill] sm:$0xff] %v3837_v26  ;;  %v2553_v27 = vpop.f32.mrb[85].mxu0  ;;  %1774 = vmax.xlane.f32.xlu1 %v3837_v26 }
 0x70b   : > { %v2554_v29 = vadd.f32 %v2553_v27, %v2552_v25  ;;  %v2555_v35 = vpop.f32.mrb[86].mxu0 }
 0x70c   : > { %v2556_v37 = vpop.f32.mrb[87].mxu0 }
 0x70d   : > { %v1667_v39 = vadd.f32 %v2554_v29, %v3681_v53  ;;  %v2557_v40 = vadd.f32 %v2556_v37, %v2555_v35 }
 0x70f   : > { %v1670_v41 = vadd.f32 %v2557_v40, %v3681_v53  ;;  %v3844_v43 = vsel %vm1691_vm1, %v1667_v39, -inf }
 0x710   : > { %4135 = vst [vmem:[#allocation17_spill] sm:$0xff] %v3844_v43  ;;  %1776 = vmax.xlane.f32.xlu0 %v3844_v43 }
 0x711   : > { %v2558_v47 = vpop.f32.mrb[88].mxu0  ;;  %v3849_v48 = vsel %vm1691_vm1, %v1670_v41, -inf }
 0x712   : > { %4136 = vst [vmem:[#allocation18_spill] sm:$0xff] %v3849_v48  ;;  %v2559_v49 = vpop.f32.mrb[89].mxu0  ;;  %1778 = vmax.xlane.f32.xlu1 %v3849_v48 }
 0x713   : > { %v2560_v9 = vadd.f32 %v2559_v49, %v2558_v47  ;;  %v2561_v13 = vpop.f32.mrb[90].mxu0 }
 0x714   : > { %v2562_v15 = vpop.f32.mrb[91].mxu0 }
 0x715   : > { %v1675_v20 = vadd.f32 %v2560_v9, %v3681_v53  ;;  %v2563_v21 = vadd.f32 %v2562_v15, %v2561_v13 }
 0x717   : > { %v1678_v28 = vadd.f32 %v2563_v21, %v3681_v53  ;;  %v3856_v31 = vsel %vm1691_vm1, %v1675_v20, -inf }
 0x718   : > { %4137 = vst [vmem:[#allocation19_spill] sm:$0xff] %v3856_v31  ;;  %1780 = vmax.xlane.f32.xlu0 %v3856_v31 }
 0x719   : > { %v2564_v14 = vpop.f32.mrb[92].mxu0  ;;  %v3861_v30 = vsel %vm1691_vm1, %v1678_v28, -inf }
 0x71a   : > { %4138 = vst [vmem:[#allocation20_spill] sm:$0xff] %v3861_v30  ;;  %v2565_v44 = vpop.f32.mrb[93].mxu0  ;;  %1782 = vmax.xlane.f32.xlu1 %v3861_v30 }
 0x71b   : > { %v2566_v50 = vadd.f32 %v2565_v44, %v2564_v14  ;;  %v2567_v54 = vpop.f32.mrb[94].mxu0 }
 0x71c   : > { %v2568_v55 = vpop.f32.mrb[95].mxu0 }
 0x71d   : > { %v1683_v56 = vadd.f32 %v2566_v50, %v3681_v53  ;;  %v2569_v57 = vadd.f32 %v2568_v55, %v2567_v54 }
 0x71f   : > { %v1686_v58 = vadd.f32 %v2569_v57, %v3681_v53  ;;  %v3868_v63 = vsel %vm1691_vm1, %v1683_v56, -inf }
 0x720   : > { %4139 = vst [vmem:[#allocation21_spill] sm:$0xff] %v3868_v63  ;;  %1784 = vmax.xlane.f32.xlu0 %v3868_v63 }
 0x721   : > { %v3873_v2 = vsel %vm1691_vm1, %v1686_v58, -inf }
 0x722   : > { %4140 = vst [vmem:[#allocation22_spill] sm:$0xff] %v3873_v2  ;;  %1786 = vmax.xlane.f32.xlu1 %v3873_v2 }
 0x735   : > { %v3876_v3 = vpop.xlane.xlu0 %1724 }
 0x736   : > { %v1788_v4 = vsub.f32 %v3688_v61, %v3876_v3 }
 0x738   : > { %v1820_v5 = vmul.f32 1.442695, %v1788_v4 }
 0x739   : > { %v3880_v6 = vpop.xlane.xlu0 %1726 }
 0x73a   : > { %2788 = vpow2.f32 %v1820_v5  ;;  %v1789_v53 = vsub.f32 %v3693_v1, %v3880_v6 }
 0x73c   : > { %v1822_v12 = vmul.f32 1.442695, %v1789_v53 }
 0x73d   : > { %v3884_v19 = vpop.xlane.xlu1 %1728 }
 0x73e   : > { %2790 = vpow2.f32 %v1822_v12  ;;  %v1790_v46 = vsub.f32 %v3700_v7, %v3884_v19 }
 0x740   : > { %v1824_v25 = vmul.f32 1.442695, %v1790_v46 }
 0x741   : > { %v3888_v27 = vpop.xlane.xlu1 %1730 }
 0x742   : > { %2792 = vpow2.f32 %v1824_v25  ;;  %v1791_v29 = vsub.f32 %v3705_v23, %v3888_v27 }
 0x744   : > { %v2789_v35 = vpop.eup %2788  ;;  %v1826_v37 = vmul.f32 1.442695, %v1791_v29 }
 0x745   : > { %1884 = vadd.xlane.f32.xlu0 %v2789_v35  ;;  %v3892_v39 = vpop.xlane.xlu0 %1732 }
 0x746   : > { %2794 = vpow2.f32 %v1826_v37  ;;  %v1792_v40 = vsub.f32 %v3712_v22, %v3892_v39 }
 0x747   : > { %v3896_v41 = vpop.xlane.xlu1 %1734 }
 0x748   : > { %v2791_v47 = vpop.eup %2790  ;;  %v1828_v49 = vmul.f32 1.442695, %v1792_v40  ;;  %v1793_v9 = vsub.f32 %v3717_v33, %v3896_v41 }
 0x749   : > { %1886 = vadd.xlane.f32.xlu1 %v2791_v47 }
 0x74a   : > { %2796 = vpow2.f32 %v1828_v49  ;;  %v1830_v13 = vmul.f32 1.442695, %v1793_v9 }
 0x74c   : > { %v2793_v15 = vpop.eup %2792  ;;  %2798 = vpow2.f32 %v1830_v13 }
 0x74d   : > { %1888 = vadd.xlane.f32.xlu0 %v2793_v15  ;;  %v3900_v20 = vpop.xlane.xlu0 %1736 }
 0x74e   : > { %v1794_v21 = vsub.f32 %v3724_v42, %v3900_v20 }
 0x74f   : > { %v3904_v28 = vpop.xlane.xlu1 %1738 }
 0x750   : > { %v2795_v14 = vpop.eup %2794  ;;  %v1832_v44 = vmul.f32 1.442695, %v1794_v21  ;;  %v1795_v50 = vsub.f32 %v3729_v45, %v3904_v28 }
 0x751   : > { %1890 = vadd.xlane.f32.xlu1 %v2795_v14 }
 0x752   : > { %2800 = vpow2.f32 %v1832_v44  ;;  %v1834_v54 = vmul.f32 1.442695, %v1795_v50 }
 0x754   : > { %v2797_v55 = vpop.eup %2796  ;;  %2802 = vpow2.f32 %v1834_v54 }
 0x755   : > { %1892 = vadd.xlane.f32.xlu0 %v2797_v55  ;;  %v3908_v56 = vpop.xlane.xlu0 %1740 }
 0x756   : > { %v2799_v57 = vpop.eup %2798  ;;  %v1796_v58 = vsub.f32 %v3736_v52, %v3908_v56 }
 0x757   : > { %v3912_v4 = vpop.xlane.xlu1 %1742  ;;  %1894 = vadd.xlane.f32.xlu1 %v2799_v57 }
 0x758   : > { %v1836_v5 = vmul.f32 1.442695, %v1796_v58  ;;  %v1797_v53 = vsub.f32 %v3741_v18, %v3912_v4 }
 0x75a   : > { %2804 = vpow2.f32 %v1836_v5  ;;  %v1838_v12 = vmul.f32 1.442695, %v1797_v53 }
 0x75c   : > { %v2801_v46 = vpop.eup %2800  ;;  %2806 = vpow2.f32 %v1838_v12 }
 0x75d   : > { %1896 = vadd.xlane.f32.xlu0 %v2801_v46  ;;  %v3916_v25 = vpop.xlane.xlu0 %1744 }
 0x75e   : > { %v2803_v29 = vpop.eup %2802  ;;  %v1798_v35 = vsub.f32 %v3748_v32, %v3916_v25 }
 0x75f   : > { %v3920_v37 = vpop.xlane.xlu1 %1746  ;;  %1898 = vadd.xlane.f32.xlu1 %v2803_v29 }
 0x760   : > { %v1840_v40 = vmul.f32 1.442695, %v1798_v35  ;;  %v1799_v47 = vsub.f32 %v3753_v36, %v3920_v37 }
 0x762   : > { %2808 = vpow2.f32 %v1840_v40  ;;  %v1842_v49 = vmul.f32 1.442695, %v1799_v47 }
 0x764   : > { %v2805_v9 = vpop.eup %2804  ;;  %2810 = vpow2.f32 %v1842_v49 }
 0x765   : > { %1900 = vadd.xlane.f32.xlu0 %v2805_v9  ;;  %v3924_v13 = vpop.xlane.xlu0 %1748 }
 0x766   : > { %v2807_v15 = vpop.eup %2806  ;;  %v1800_v21 = vsub.f32 %v3760_v59, %v3924_v13 }
 0x767   : > { %v3928_v14 = vpop.xlane.xlu1 %1750  ;;  %1902 = vadd.xlane.f32.xlu1 %v2807_v15 }
 0x768   : > { %v1844_v44 = vmul.f32 1.442695, %v1800_v21  ;;  %v1801_v50 = vsub.f32 %v3765_v62, %v3928_v14 }
 0x76a   : > { %2812 = vpow2.f32 %v1844_v44  ;;  %v1846_v54 = vmul.f32 1.442695, %v1801_v50 }
 0x76c   : > { %v2809_v55 = vpop.eup %2808  ;;  %2814 = vpow2.f32 %v1846_v54 }
 0x76d   : > { %1904 = vadd.xlane.f32.xlu0 %v2809_v55  ;;  %v3932_v57 = vpop.xlane.xlu0 %1752 }
 0x76e   : > { %v2811_v58 = vpop.eup %2810  ;;  %v1802_v5 = vsub.f32 %v3772_v10, %v3932_v57 }
 0x76f   : > { %v3936_v53 = vpop.xlane.xlu1 %1754  ;;  %1906 = vadd.xlane.f32.xlu1 %v2811_v58 }
 0x770   : > { %v1848_v12 = vmul.f32 1.442695, %v1802_v5  ;;  %v1803_v46 = vsub.f32 %v3777_v17, %v3936_v53 }
 0x772   : > { %2816 = vpow2.f32 %v1848_v12  ;;  %v1850_v29 = vmul.f32 1.442695, %v1803_v46 }
 0x774   : > { %v2813_v35 = vpop.eup %2812  ;;  %2818 = vpow2.f32 %v1850_v29 }
 0x775   : > { %1908 = vadd.xlane.f32.xlu0 %v2813_v35  ;;  %v3940_v40 = vpop.xlane.xlu0 %1756 }
 0x776   : > { %v2815_v47 = vpop.eup %2814  ;;  %v1804_v49 = vsub.f32 %v3784_v51, %v3940_v40 }
 0x777   : > { %v3944_v9 = vpop.xlane.xlu1 %1758  ;;  %1910 = vadd.xlane.f32.xlu1 %v2815_v47 }
 0x778   : > { %v1852_v15 = vmul.f32 1.442695, %v1804_v49  ;;  %v1805_v21 = vsub.f32 %v3789_v38, %v3944_v9 }
 0x77a   : > { %2820 = vpow2.f32 %v1852_v15  ;;  %v1854_v44 = vmul.f32 1.442695, %v1805_v21 }
 0x77c   : > { %v2817_v50 = vpop.eup %2816  ;;  %2822 = vpow2.f32 %v1854_v44 }
 0x77d   : > { %1912 = vadd.xlane.f32.xlu0 %v2817_v50  ;;  %v3948_v54 = vpop.xlane.xlu0 %1760 }
 0x77e   : > { %v2819_v55 = vpop.eup %2818  ;;  %v1806_v58 = vsub.f32 %v3796_v8, %v3948_v54 }
 0x77f   : > { %v3952_v5 = vpop.xlane.xlu1 %1762  ;;  %1914 = vadd.xlane.f32.xlu1 %v2819_v55 }
 0x780   : > { %v1856_v12 = vmul.f32 1.442695, %v1806_v58  ;;  %v1807_v46 = vsub.f32 %v3801_v11, %v3952_v5 }
 0x782   : > { %2824 = vpow2.f32 %v1856_v12  ;;  %v1858_v29 = vmul.f32 1.442695, %v1807_v46 }
 0x784   : > { %v2821_v35 = vpop.eup %2820  ;;  %2826 = vpow2.f32 %v1858_v29 }
 0x785   : > { %1916 = vadd.xlane.f32.xlu0 %v2821_v35  ;;  %v3956_v47 = vpop.xlane.xlu0 %1764 }
 0x786   : > { %v2823_v49 = vpop.eup %2822  ;;  %v1808_v15 = vsub.f32 %v3808_v16, %v3956_v47 }
 0x787   : > { %v3960_v21 = vpop.xlane.xlu1 %1766  ;;  %1918 = vadd.xlane.f32.xlu1 %v2823_v49 }
 0x788   : > { %v1860_v44 = vmul.f32 1.442695, %v1808_v15  ;;  %v1809_v50 = vsub.f32 %v3813_v34, %v3960_v21 }
 0x78a   : > { %2828 = vpow2.f32 %v1860_v44  ;;  %v1862_v55 = vmul.f32 1.442695, %v1809_v50 }
 0x78c   : > { %v2825_v58 = vpop.eup %2824  ;;  %2830 = vpow2.f32 %v1862_v55 }
 0x78d   : > { %1920 = vadd.xlane.f32.xlu0 %v2825_v58  ;;  %v3964_v12 = vpop.xlane.xlu0 %1768 }
 0x78e   : > { %v2827_v46 = vpop.eup %2826  ;;  %v1810_v29 = vsub.f32 %v3820_v60, %v3964_v12 }
 0x78f   : > { %v3968_v35 = vpop.xlane.xlu1 %1770  ;;  %1922 = vadd.xlane.f32.xlu1 %v2827_v46 }
 0x790   : > { %v1864_v16 = vmul.f32 1.442695, %v1810_v29  ;;  %v1811_v49 = vsub.f32 %v3825_v0, %v3968_v35 }
 0x792   : > { %2832 = vpow2.f32 %v1864_v16  ;;  %v1866_v15 = vmul.f32 1.442695, %v1811_v49 }
 0x794   : > { %v2829_v44 = vpop.eup %2828  ;;  %2834 = vpow2.f32 %v1866_v15 }
 0x795   : > { %1924 = vadd.xlane.f32.xlu0 %v2829_v44  ;;  %v3972_v50 = vpop.xlane.xlu0 %1772 }
 0x796   : > { %v2831_v55 = vpop.eup %2830  ;;  %v1812_v58 = vsub.f32 %v3832_v24, %v3972_v50 }
 0x797   : > { %v3976_v34 = vpop.xlane.xlu1 %1774  ;;  %1926 = vadd.xlane.f32.xlu1 %v2831_v55 }
 0x798   : > { %v1868_v60 = vmul.f32 1.442695, %v1812_v58  ;;  %v1813_v46 = vsub.f32 %v3837_v26, %v3976_v34 }
 0x79a   : > { %2836 = vpow2.f32 %v1868_v60  ;;  %v1870_v29 = vmul.f32 1.442695, %v1813_v46 }
 0x79c   : > { %v2833_v16 = vpop.eup %2832  ;;  %2838 = vpow2.f32 %v1870_v29 }
 0x79d   : > { %1928 = vadd.xlane.f32.xlu0 %v2833_v16  ;;  %v3980_v49 = vpop.xlane.xlu0 %1776 }
 0x79e   : > { %v2835_v15 = vpop.eup %2834  ;;  %v1814_v44 = vsub.f32 %v3844_v43, %v3980_v49 }
 0x79f   : > { %v3984_v0 = vpop.xlane.xlu1 %1778  ;;  %1930 = vadd.xlane.f32.xlu1 %v2835_v15 }
 0x7a0   : > { %v1872_v24 = vmul.f32 1.442695, %v1814_v44  ;;  %v1815_v55 = vsub.f32 %v3849_v48, %v3984_v0 }
 0x7a2   : > { %2840 = vpow2.f32 %v1872_v24  ;;  %v1874_v58 = vmul.f32 1.442695, %v1815_v55 }
 0x7a4   : > { %v2837_v60 = vpop.eup %2836  ;;  %2842 = vpow2.f32 %v1874_v58 }
 0x7a5   : > { %1932 = vadd.xlane.f32.xlu0 %v2837_v60  ;;  %v3988_v46 = vpop.xlane.xlu0 %1780 }
 0x7a6   : > { %v2839_v29 = vpop.eup %2838  ;;  %v1816_v16 = vsub.f32 %v3856_v31, %v3988_v46 }
 0x7a7   : > { %v3992_v26 = vpop.xlane.xlu1 %1782  ;;  %1934 = vadd.xlane.f32.xlu1 %v2839_v29 }
 0x7a8   : > { %v1876_v43 = vmul.f32 1.442695, %v1816_v16  ;;  %v1817_v15 = vsub.f32 %v3861_v30, %v3992_v26 }
 0x7aa   : > { %2844 = vpow2.f32 %v1876_v43  ;;  %v1878_v44 = vmul.f32 1.442695, %v1817_v15 }
 0x7ac   : > { %v2841_v24 = vpop.eup %2840  ;;  %2846 = vpow2.f32 %v1878_v44 }
 0x7ad   : > { %1936 = vadd.xlane.f32.xlu0 %v2841_v24  ;;  %v3996_v55 = vpop.xlane.xlu0 %1784 }
 0x7ae   : > { %4141 = vst [vmem:[#allocation23_spill] sm:$0xff] %v3996_v55  ;;  %v2843_v58 = vpop.eup %2842  ;;  %v1818_v60 = vsub.f32 %v3868_v63, %v3996_v55 }
 0x7af   : > { %v4000_v48 = vpop.xlane.xlu1 %1786  ;;  %1938 = vadd.xlane.f32.xlu1 %v2843_v58 }
 0x7b0   : > { %v1880_v31 = vmul.f32 1.442695, %v1818_v60  ;;  %v1819_v29 = vsub.f32 %v3873_v2, %v4000_v48 }
 0x7b2   : > { %2848 = vpow2.f32 %v1880_v31  ;;  %v1882_v16 = vmul.f32 1.442695, %v1819_v29 }
 0x7b4   : > { %v2845_v43 = vpop.eup %2844  ;;  %2850 = vpow2.f32 %v1882_v16 }
 0x7b5   : > { %1940 = vadd.xlane.f32.xlu0 %v2845_v43 }
 0x7b6   : > { %v2847_v15 = vpop.eup %2846 }
 0x7b7   : > { %1942 = vadd.xlane.f32.xlu1 %v2847_v15 }
 0x7bc   : > { %v2849_v44 = vpop.eup %2848 }
 0x7bd   : > { %1944 = vadd.xlane.f32.xlu0 %v2849_v44 }
 0x7be   : > { %v2851_v24 = vpop.eup %2850 }
 0x7bf   : > { %1946 = vadd.xlane.f32.xlu1 %v2851_v24 }
 0x7d2   : > { %v1885_v30 = vpop.xlane.xlu0 %1884 }
 0x7d3   : > { %2852 = vlog2.f32 %v1885_v30 }
 0x7d6   : > { %v1887_v63 = vpop.xlane.xlu1 %1886 }
 0x7d7   : > { %2854 = vlog2.f32 %v1887_v63 }
 0x7da   : > { %v1889_v58 = vpop.xlane.xlu0 %1888 }
 0x7db   : > { %2856 = vlog2.f32 %v1889_v58 }
 0x7dd   : > { %v2853_v60 = vpop.eup %2852 }
 0x7de   : > { %v1949_v55 = vmul.f32 0.6931472, %v2853_v60  ;;  %v1891_v2 = vpop.xlane.xlu1 %1890 }
 0x7df   : > { %2858 = vlog2.f32 %v1891_v2 }
 0x7e0   : > { %v2012_v31 = vadd.f32 %v1949_v55, %v3876_v3 }
 0x7e1   : > { %v2855_v29 = vpop.eup %2854 }
 0x7e2   : > { %v2044_v16 = vsub.f32 %v3688_v61, %v2012_v31  ;;  %v1951_v43 = vmul.f32 0.6931472, %v2855_v29  ;;  %v1893_v15 = vpop.xlane.xlu0 %1892 }
 0x7e3   : > { %2860 = vlog2.f32 %v1893_v15 }
 0x7e4   : > { %2076 = vst [vmem:[#allocation8] sm:$0xff] %v2044_v16  ;;  %v2013_v44 = vadd.f32 %v1951_v43, %v3880_v6  ;;  %v1895_v30 = vpop.xlane.xlu1 %1894 }
 0x7e5   : > { %v2857_v24 = vpop.eup %2856  ;;  %2862 = vlog2.f32 %v1895_v30 }
 0x7e6   : > { %v2045_v63 = vsub.f32 %v3693_v1, %v2013_v44  ;;  %v1953_v58 = vmul.f32 0.6931472, %v2857_v24 }
 0x7e8   : > { %2077 = vst [vmem:[#allocation8 + $0x8] sm:$0xff] %v2045_v63  ;;  %v2014_v2 = vadd.f32 %v1953_v58, %v3884_v19 }
 0x7e9   : > { %v2859_v60 = vpop.eup %2858 }
 0x7ea   : > { %v2046_v3 = vsub.f32 %v3700_v7, %v2014_v2  ;;  %v1955_v55 = vmul.f32 0.6931472, %v2859_v60  ;;  %v1897_v61 = vpop.xlane.xlu0 %1896 }
 0x7eb   : > { %2864 = vlog2.f32 %v1897_v61 }
 0x7ec   : > { %2078 = vst [vmem:[#allocation8 + $0x10] sm:$0xff] %v2046_v3  ;;  %v2015_v31 = vadd.f32 %v1955_v55, %v3888_v27  ;;  %v1899_v29 = vpop.xlane.xlu1 %1898 }
 0x7ed   : > { %v2861_v6 = vpop.eup %2860  ;;  %2866 = vlog2.f32 %v1899_v29 }
 0x7ee   : > { %v2047_v16 = vsub.f32 %v3705_v23, %v2015_v31  ;;  %v1957_v43 = vmul.f32 0.6931472, %v2861_v6 }
 0x7ef   : > { %v2863_v1 = vpop.eup %2862 }
 0x7f0   : > { %2079 = vst [vmem:[#allocation8 + $0x18] sm:$0xff] %v2047_v16  ;;  %v2016_v15 = vadd.f32 %v1957_v43, %v3892_v39  ;;  %v1959_v19 = vmul.f32 0.6931472, %v2863_v1 }
 0x7f2   : > { %v2048_v44 = vsub.f32 %v3712_v22, %v2016_v15  ;;  %v2017_v7 = vadd.f32 %v1959_v19, %v3896_v41  ;;  %v1901_v30 = vpop.xlane.xlu0 %1900 }
 0x7f3   : > { %2868 = vlog2.f32 %v1901_v30 }
 0x7f4   : > { %2080 = vst [vmem:[#allocation8 + $0x20] sm:$0xff] %v2048_v44  ;;  %v2049_v27 = vsub.f32 %v3717_v33, %v2017_v7  ;;  %v1903_v24 = vpop.xlane.xlu1 %1902 }
 0x7f5   : > { %v2865_v63 = vpop.eup %2864  ;;  %2870 = vlog2.f32 %v1903_v24 }
 0x7f6   : > { %2081 = vst [vmem:[#allocation8 + $0x28] sm:$0xff] %v2049_v27  ;;  %v1961_v23 = vmul.f32 0.6931472, %v2865_v63 }
 0x7f7   : > { %v2867_v58 = vpop.eup %2866 }
 0x7f8   : > { %v2018_v2 = vadd.f32 %v1961_v23, %v3900_v20  ;;  %v1963_v60 = vmul.f32 0.6931472, %v2867_v58 }
 0x7fa   : > { %v2050_v39 = vsub.f32 %v3724_v42, %v2018_v2  ;;  %v2019_v22 = vadd.f32 %v1963_v60, %v3904_v28  ;;  %v1905_v3 = vpop.xlane.xlu0 %1904 }
 0x7fb   : > { %2872 = vlog2.f32 %v1905_v3 }
 0x7fc   : > { %2082 = vst [vmem:[#allocation8 + $0x30] sm:$0xff] %v2050_v39  ;;  %v2051_v41 = vsub.f32 %v3729_v45, %v2019_v22  ;;  %v1907_v55 = vpop.xlane.xlu1 %1906 }
 0x7fd   : > { %v2869_v33 = vpop.eup %2868  ;;  %2874 = vlog2.f32 %v1907_v55 }
 0x7fe   : > { %2083 = vst [vmem:[#allocation8 + $0x38] sm:$0xff] %v2051_v41  ;;  %v1965_v61 = vmul.f32 0.6931472, %v2869_v33 }
 0x7ff   : > { %v2871_v31 = vpop.eup %2870 }
 0x800   : > { %v2020_v29 = vadd.f32 %v1965_v61, %v3908_v56  ;;  %v1967_v6 = vmul.f32 0.6931472, %v2871_v31 }
 0x802   : > { %v2052_v20 = vsub.f32 %v3736_v52, %v2020_v29  ;;  %v2021_v42 = vadd.f32 %v1967_v6, %v3912_v4  ;;  %v1909_v16 = vpop.xlane.xlu0 %1908 }
 0x803   : > { %2876 = vlog2.f32 %v1909_v16 }
 0x804   : > { %2084 = vst [vmem:[#allocation8 + $0x40] sm:$0xff] %v2052_v20  ;;  %v2053_v28 = vsub.f32 %v3741_v18, %v2021_v42  ;;  %v1911_v43 = vpop.xlane.xlu1 %1910 }
 0x805   : > { %v2873_v45 = vpop.eup %2872  ;;  %2878 = vlog2.f32 %v1911_v43 }
 0x806   : > { %2085 = vst [vmem:[#allocation8 + $0x48] sm:$0xff] %v2053_v28  ;;  %v1969_v1 = vmul.f32 0.6931472, %v2873_v45 }
 0x807   : > { %v2875_v15 = vpop.eup %2874 }
 0x808   : > { %v2022_v19 = vadd.f32 %v1969_v1, %v3916_v25  ;;  %v1971_v44 = vmul.f32 0.6931472, %v2875_v15 }
 0x80a   : > { %v2054_v56 = vsub.f32 %v3748_v32, %v2022_v19  ;;  %v2023_v52 = vadd.f32 %v1971_v44, %v3920_v37  ;;  %v1913_v7 = vpop.xlane.xlu0 %1912 }
 0x80b   : > { %2880 = vlog2.f32 %v1913_v7 }
 0x80c   : > { %2086 = vst [vmem:[#allocation8 + $0x50] sm:$0xff] %v2054_v56  ;;  %v2055_v4 = vsub.f32 %v3753_v36, %v2023_v52  ;;  %v1915_v30 = vpop.xlane.xlu1 %1914 }
 0x80d   : > { %v2877_v18 = vpop.eup %2876  ;;  %2882 = vlog2.f32 %v1915_v30 }
 0x80e   : > { %2087 = vst [vmem:[#allocation8 + $0x58] sm:$0xff] %v2055_v4  ;;  %v1973_v27 = vmul.f32 0.6931472, %v2877_v18 }
 0x80f   : > { %v2879_v24 = vpop.eup %2878 }
 0x810   : > { %v2024_v63 = vadd.f32 %v1973_v27, %v3924_v13  ;;  %v1975_v23 = vmul.f32 0.6931472, %v2879_v24 }
 0x812   : > { %v2056_v25 = vsub.f32 %v3760_v59, %v2024_v63  ;;  %v2025_v32 = vadd.f32 %v1975_v23, %v3928_v14  ;;  %v1917_v58 = vpop.xlane.xlu0 %1916 }
 0x813   : > { %2884 = vlog2.f32 %v1917_v58 }
 0x814   : > { %2088 = vst [vmem:[#allocation8 + $0x60] sm:$0xff] %v2056_v25  ;;  %v2057_v37 = vsub.f32 %v3765_v62, %v2025_v32  ;;  %v1919_v2 = vpop.xlane.xlu1 %1918 }
 0x815   : > { %v2881_v36 = vpop.eup %2880  ;;  %2886 = vlog2.f32 %v1919_v2 }
 0x816   : > { %2089 = vst [vmem:[#allocation8 + $0x68] sm:$0xff] %v2057_v37  ;;  %v1977_v60 = vmul.f32 0.6931472, %v2881_v36 }
 0x817   : > { %v2883_v39 = vpop.eup %2882 }
 0x818   : > { %v2026_v22 = vadd.f32 %v1977_v60, %v3932_v57  ;;  %v1979_v3 = vmul.f32 0.6931472, %v2883_v39 }
 0x81a   : > { %v2058_v13 = vsub.f32 %v3772_v10, %v2026_v22  ;;  %v2027_v59 = vadd.f32 %v1979_v3, %v3936_v53  ;;  %v1921_v41 = vpop.xlane.xlu0 %1920 }
 0x81b   : > { %2888 = vlog2.f32 %v1921_v41 }
 0x81c   : > { %2090 = vst [vmem:[#allocation8 + $0x70] sm:$0xff] %v2058_v13  ;;  %v2059_v14 = vsub.f32 %v3777_v17, %v2027_v59  ;;  %v1923_v55 = vpop.xlane.xlu1 %1922 }
 0x81d   : > { %v2885_v62 = vpop.eup %2884  ;;  %2890 = vlog2.f32 %v1923_v55 }
 0x81e   : > { %2091 = vst [vmem:[#allocation8 + $0x78] sm:$0xff] %v2059_v14  ;;  %v1981_v33 = vmul.f32 0.6931472, %v2885_v62 }
 0x81f   : > { %v2887_v61 = vpop.eup %2886 }
 0x820   : > { %v2028_v31 = vadd.f32 %v1981_v33, %v3940_v40  ;;  %v1983_v29 = vmul.f32 0.6931472, %v2887_v61 }
 0x822   : > { %v2060_v57 = vsub.f32 %v3784_v51, %v2028_v31  ;;  %v2029_v10 = vadd.f32 %v1983_v29, %v3944_v9  ;;  %v1925_v6 = vpop.xlane.xlu0 %1924 }
 0x823   : > { %2892 = vlog2.f32 %v1925_v6 }
 0x824   : > { %2092 = vst [vmem:[#allocation8 + $0x80] sm:$0xff] %v2060_v57  ;;  %v2061_v53 = vsub.f32 %v3789_v38, %v2029_v10  ;;  %v1927_v20 = vpop.xlane.xlu1 %1926 }
 0x825   : > { %v2889_v17 = vpop.eup %2888  ;;  %2894 = vlog2.f32 %v1927_v20 }
 0x826   : > { %2093 = vst [vmem:[#allocation8 + $0x88] sm:$0xff] %v2061_v53  ;;  %v1985_v42 = vmul.f32 0.6931472, %v2889_v17 }
 0x827   : > { %v2891_v16 = vpop.eup %2890 }
 0x828   : > { %v2030_v28 = vadd.f32 %v1985_v42, %v3948_v54  ;;  %v1987_v43 = vmul.f32 0.6931472, %v2891_v16  ;;  %v4142_v54 = vld [vmem:[#allocation11_spill] sm:$0xff] }
 0x82a   : > { %v2062_v40 = vsub.f32 %v3796_v8, %v2030_v28  ;;  %v2031_v51 = vadd.f32 %v1987_v43, %v3952_v5  ;;  %v1929_v45 = vpop.xlane.xlu0 %1928  ;;  %v4143_v5 = vld [vmem:[#allocation12_spill] sm:$0xff] }
 0x82b   : > { %2896 = vlog2.f32 %v1929_v45 }
 0x82c   : > { %2094 = vst [vmem:[#allocation8 + $0x90] sm:$0xff] %v2062_v40  ;;  %v2063_v9 = vsub.f32 %v3801_v11, %v2031_v51  ;;  %v1931_v1 = vpop.xlane.xlu1 %1930 }
 0x82d   : > { %v2893_v38 = vpop.eup %2892  ;;  %2898 = vlog2.f32 %v1931_v1 }
 0x82e   : > { %2095 = vst [vmem:[#allocation8 + $0x98] sm:$0xff] %v2063_v9  ;;  %v1989_v15 = vmul.f32 0.6931472, %v2893_v38  ;;  %v4152_v38 = vld [vmem:[#allocation23_spill] sm:$0xff] }
 0x82f   : > { %v2895_v19 = vpop.eup %2894 }
 0x830   : > { %v2032_v44 = vadd.f32 %v1989_v15, %v3956_v47  ;;  %v1991_v56 = vmul.f32 0.6931472, %v2895_v19  ;;  %v4144_v47 = vld [vmem:[#allocation13_spill] sm:$0xff] }
 0x832   : > { %v2064_v52 = vsub.f32 %v4142_v54, %v2032_v44  ;;  %v2033_v8 = vadd.f32 %v1991_v56, %v3960_v21  ;;  %v1933_v7 = vpop.xlane.xlu0 %1932  ;;  %v4145_v21 = vld [vmem:[#allocation14_spill] sm:$0xff]  ;;  %v4153_v44 = vld [vmem:[#allocation21_spill] sm:$0xff] }
 0x833   : > { %2900 = vlog2.f32 %v1933_v7 }
 0x834   : > { %2096 = vst [vmem:[#allocation8 + $0xa0] sm:$0xff] %v2064_v52  ;;  %v2065_v4 = vsub.f32 %v4143_v5, %v2033_v8  ;;  %v1935_v30 = vpop.xlane.xlu1 %1934 }
 0x835   : > { %v2897_v11 = vpop.eup %2896  ;;  %2902 = vlog2.f32 %v1935_v30 }
 0x836   : > { %2097 = vst [vmem:[#allocation8 + $0xa8] sm:$0xff] %v2065_v4  ;;  %v1993_v18 = vmul.f32 0.6931472, %v2897_v11 }
 0x837   : > { %v2899_v27 = vpop.eup %2898 }
 0x838   : > { %v2034_v24 = vadd.f32 %v1993_v18, %v3964_v12  ;;  %v1995_v63 = vmul.f32 0.6931472, %v2899_v27  ;;  %v4146_v12 = vld [vmem:[#allocation15_spill] sm:$0xff] }
 0x83a   : > { %v2066_v23 = vsub.f32 %v4144_v47, %v2034_v24  ;;  %v2035_v25 = vadd.f32 %v1995_v63, %v3968_v35  ;;  %v1937_v32 = vpop.xlane.xlu0 %1936  ;;  %v4147_v35 = vld [vmem:[#allocation16_spill] sm:$0xff] }
 0x83b   : > { %2904 = vlog2.f32 %v1937_v32 }
 0x83c   : > { %2098 = vst [vmem:[#allocation8 + $0xb0] sm:$0xff] %v2066_v23  ;;  %v2067_v58 = vsub.f32 %v4145_v21, %v2035_v25  ;;  %v1939_v37 = vpop.xlane.xlu1 %1938 }
 0x83d   : > { %v2901_v2 = vpop.eup %2900  ;;  %2906 = vlog2.f32 %v1939_v37 }
 0x83e   : > { %2099 = vst [vmem:[#allocation8 + $0xb8] sm:$0xff] %v2067_v58  ;;  %v1997_v36 = vmul.f32 0.6931472, %v2901_v2 }
 0x83f   : > { %v2903_v60 = vpop.eup %2902 }
 0x840   : > { %v2036_v39 = vadd.f32 %v1997_v36, %v3972_v50  ;;  %v1999_v22 = vmul.f32 0.6931472, %v2903_v60  ;;  %v4148_v50 = vld [vmem:[#allocation17_spill] sm:$0xff] }
 0x842   : > { %v2068_v3 = vsub.f32 %v4146_v12, %v2036_v39  ;;  %v2037_v13 = vadd.f32 %v1999_v22, %v3976_v34  ;;  %v1941_v59 = vpop.xlane.xlu0 %1940  ;;  %v4149_v34 = vld [vmem:[#allocation18_spill] sm:$0xff] }
 0x843   : > { %2908 = vlog2.f32 %v1941_v59 }
 0x844   : > { %2100 = vst [vmem:[#allocation8 + $0xc0] sm:$0xff] %v2068_v3  ;;  %v2069_v41 = vsub.f32 %v4147_v35, %v2037_v13  ;;  %v1943_v14 = vpop.xlane.xlu1 %1942 }
 0x845   : > { %v2905_v55 = vpop.eup %2904  ;;  %2910 = vlog2.f32 %v1943_v14 }
 0x846   : > { %2101 = vst [vmem:[#allocation8 + $0xc8] sm:$0xff] %v2069_v41  ;;  %v2001_v62 = vmul.f32 0.6931472, %v2905_v55 }
 0x847   : > { %v2907_v33 = vpop.eup %2906 }
 0x848   : > { %v2038_v61 = vadd.f32 %v2001_v62, %v3980_v49  ;;  %v2003_v31 = vmul.f32 0.6931472, %v2907_v33  ;;  %v4150_v49 = vld [vmem:[#allocation19_spill] sm:$0xff] }
 0x84a   : > { %v2070_v29 = vsub.f32 %v4148_v50, %v2038_v61  ;;  %v2039_v57 = vadd.f32 %v2003_v31, %v3984_v0  ;;  %v1945_v10 = vpop.xlane.xlu0 %1944  ;;  %v4151_v0 = vld [vmem:[#allocation20_spill] sm:$0xff] }
 0x84b   : > { %2912 = vlog2.f32 %v1945_v10 }
 0x84c   : > { %2102 = vst [vmem:[#allocation8 + $0xd0] sm:$0xff] %v2070_v29  ;;  %v2071_v6 = vsub.f32 %v4149_v34, %v2039_v57  ;;  %v1947_v53 = vpop.xlane.xlu1 %1946 }
 0x84d   : > { %v2909_v20 = vpop.eup %2908  ;;  %2914 = vlog2.f32 %v1947_v53 }
 0x84e   : > { %2103 = vst [vmem:[#allocation8 + $0xd8] sm:$0xff] %v2071_v6  ;;  %v2005_v17 = vmul.f32 0.6931472, %v2909_v20 }
 0x84f   : > { %v2911_v42 = vpop.eup %2910 }
 0x850   : > { %v2040_v16 = vadd.f32 %v2005_v17, %v3988_v46  ;;  %v2007_v28 = vmul.f32 0.6931472, %v2911_v42  ;;  %v4154_v46 = vld [vmem:[#allocation22_spill] sm:$0xff] }
 0x852   : > { %v2072_v43 = vsub.f32 %v4150_v49, %v2040_v16  ;;  %v2041_v40 = vadd.f32 %v2007_v28, %v3992_v26 }
 0x854   : > { %2104 = vst [vmem:[#allocation8 + $0xe0] sm:$0xff] %v2072_v43  ;;  %v2073_v51 = vsub.f32 %v4151_v0, %v2041_v40 }
 0x855   : > { %v2913_v45 = vpop.eup %2912 }
 0x856   : > { %2105 = vst [vmem:[#allocation8 + $0xe8] sm:$0xff] %v2073_v51  ;;  %v2009_v9 = vmul.f32 0.6931472, %v2913_v45 }
 0x857   : > { %v2915_v1 = vpop.eup %2914 }
 0x858   : > { %v2042_v15 = vadd.f32 %v2009_v9, %v4152_v38  ;;  %v2011_v19 = vmul.f32 0.6931472, %v2915_v1 }
 0x85a   : > { %v2074_v56 = vsub.f32 %v4153_v44, %v2042_v15  ;;  %v2043_v54 = vadd.f32 %v2011_v19, %v4000_v48 }
 0x85c   : > { %2106 = vst [vmem:[#allocation8 + $0xf0] sm:$0xff] %v2074_v56  ;;  %v2075_v52 = vsub.f32 %v4154_v46, %v2043_v54 }
 0x85e   : > { %2107 = vst [vmem:[#allocation8 + $0xf8] sm:$0xff] %v2075_v52 }
 0x85f PF: > { %p2749_p9 = scmp.eq.s32.totalorder %s3082_s9, 1  ;;  %s3015_s22 = smov [#allocation8]  }
 0x860   : > { %s2114_s23 = sshll.u32 %s3015_s22, 4  ;;  %s2115_s23 = int_to_ptr.vmem [resolvable:$true] %s2114_s23 }
 0x861   : > { %s2946_s24 = scalar_lea.vmem %s2115_s23, 4096  ;;  %p2953_p10 = scmp.lt.s32.totalorder %s2115_s23, %s2115_s23 }
 0x862   : > { %p2947_p4 = scmp.ne.s32.totalorder %s2115_s23, %s2946_s24  ;;  %p2954_p12 = scmp.lt.s32.totalorder %s2946_s24, %s2946_s24 }
 0x864   : > { %p2948_p5 = pnand %p2947_p4, %p2749_p9  ;;  %p2955_p0 = por %p2954_p12, %p2953_p10 }
 0x866   : > { %p2949_p6 = pneg %p2948_p5 }
 0x868   : > { %p2956_p1 = pnand %p2955_p0, %p2949_p6 }
 0x86a   : > { %2959 = shalt.err (!%p2956_p1)
}
 0x86b   : > { %s2960_s17 = scalar_lea.hbm %s4112_s8, 4096 }
 0x86c   : > { %p2961_p2 = scmp.ne.s32.totalorder %s4112_s8, %s2960_s17  ;;  %p2966_p3 = scmp.lt.u32.totalorder %s2960_s17, %s4112_s8 }
 0x86e   : > { %p2962_p11 = pnand %p2961_p2, %p2749_p9 }
 0x870   : > { %p2963_p13 = pneg %p2962_p11 }
 0x872   : > { %p2968_p8 = pnand %p2966_p3, %p2963_p13 }
 0x874   : > { %2971 = shalt.err (!%p2968_p8)
}
 0x875   : > { %s3016_s26 = smov 128   ;;  %s3017_s27 = smov 8  }
 0x876   : > { %2741 = dma.vmem_to_hbm [thread:$0]  (%p2749_p9), %s2115_s23, 4096, %s4112_s8, [#allocation7], %s3016_s26, %s3016_s26, %s3017_s27  }
 0x877   : > { %2993 = dma.done.wait (%p2749_p9), [#allocation7], 4096  }
 0x878   : > { %2995 = vsyncadd (%p2749_p9), [#allocation7], 4294963200 }
 0x879 PF: > { %p19_p7 = scmp.ge.s32.totalorder %s3085_s10, 4   ;;  %s4155_s27 = smov %s3002_s28 }
 0x87a   : > { %s4156_s28 = smov %s3006_s29  ;;  %s4157_s29 = smov %s3095_s13 }
 0x87b   : > { %s4158_s30 = smov %s3085_s10  ;;  %21 = sbr.rel (!%p19_p7) target bundleno = 4 (0x4), region = 99 }
 0x882   :  { %2130 = vsyncpa [#allocation6], 1 }
 0x883   :  { %2132 = vsyncpa [#allocation6 + $0x1], 1 }
 0x884   :  { %2133 = vsyncpa [#allocation7], 1 }
 0x885   :  { %2135 = vsyncpa [#allocation7 + $0x1], 1 }

</bundles_post_ra>
